<compile_context>
chip_gen: v7x
topology: tpu7x:2x2x1
jax: 0.10.0
libtpu: 0.0.40
codegen_flags: <defaults>
</compile_context>

<pallas_src>
import functools

import jax
import jax.numpy as jnp
from jax.experimental import pallas as pl
from jax.experimental.pallas import tpu as pltpu

_VMEM_LIMIT = 32 * 1024 * 1024  # safe scoped-VMEM budget on v5e/v6e/v7x


# --------------------------------------------------------------------------
# L1 terms: reconstructionLoss + RLoss in one pipelined kernel
# --------------------------------------------------------------------------
def _l1_tiles(H, W, C):
    """Pick (TS, TL): TS a multiple of 8 (or full H), TL a multiple of 128 (or
    full W), sized so one (C, TS, TL) f32 block is ~1 MiB.  4 input streams x
    2 pipeline buffers then stay far below the 32 MiB scoped-VMEM budget."""
    if W < 128:
        TL = W                                # full dim (allowed when < 128)
    else:
        TL = min(1024, (W // 128) * 128)      # lane-aligned tile
    if H < 8:
        TS = H
    else:
        budget_rows = max(8, ((1 << 20) // (4 * max(C, 1) * TL)) // 8 * 8)
        TS = min((H // 8) * 8, budget_rows)
    return TS, TL


def _l1_sums_kernel(i_ref, r_ref, llow_ref, lhigh_ref, rec_ref, rl_ref,
                    *, H, W, TS, TL, need_mask):
    """grid = (N, GH, GW): N and GH "parallel" (megacore-shardable), GW is the
    revisited reduction axis.  Per-(image, row-tile) elementwise accumulators
    are zeroed at tw == 0 and added into on every lane tile; the final
    cross-lane sum is done outside the kernel."""
    tw = pl.program_id(2)

    @pl.when(tw == 0)
    def _init():
        rec_ref[...] = jnp.zeros_like(rec_ref)
        rl_ref[...] = jnp.zeros_like(rl_ref)

    f32 = jnp.float32
    r = r_ref[...].astype(f32)        # (1, C, TS, TL)
    i = i_ref[...].astype(f32)        # (1, CI, TS, TL); CI==1 broadcasts over C in VMEM
    rec = jnp.sum(jnp.abs(r * i - llow_ref[...].astype(f32)),
                  axis=1, keepdims=True)                      # (1,1,TS,TL), VPU-only
    rl = jnp.sum(jnp.abs(r - lhigh_ref[...].astype(f32)),
                 axis=1, keepdims=True)

    if need_mask:  # tail tiles: zero out-of-range rows/cols (garbage-safe via where)
        th = pl.program_id(1)
        rows = jax.lax.broadcasted_iota(jnp.int32, (1, 1, TS, TL), 2) + th * TS
        cols = jax.lax.broadcasted_iota(jnp.int32, (1, 1, TS, TL), 3) + tw * TL
        valid = jnp.logical_and(rows < H, cols < W)
        rec = jnp.where(valid, rec, 0.0)
        rl = jnp.where(valid, rl, 0.0)

    rec_ref[...] += rec
    rl_ref[...] += rl


# --------------------------------------------------------------------------
# edgePreservingLoss: roll+mask separable Sobel, two parallel pallas_calls
# --------------------------------------------------------------------------
def _shift(x, d, axis):
    """Zero-padded unit shift: out[..., i, ...] = x[..., i+d, ...] (0 if out of
    range).  XLU rotate (free slot vs the VPU) + iota border mask reproduces
    F.pad's zero padding exactly."""
    n = x.shape[axis]
    y = pltpu.roll(x, shift=(-d) % n, axis=axis)
    idx = jax.lax.broadcasted_iota(jnp.int32, x.shape, axis)
    if d > 0:
        return jnp.where(idx < n - d, y, 0.0)
    return jnp.where(idx >= -d, y, 0.0)


def _sobel_abs_maps(s):
    """|Sobel_x|, |Sobel_y| of a 2D map with zero padding, as the separable
    3-tap conv ([1,2,1] smoothing x [-1,0,1] derivative).  Sign/scale cancel
    after the reference's min/max normalization + abs."""
    dx = _shift(s, 1, 1) - _shift(s, -1, 1)                   # horizontal derivative
    gx = _shift(dx, -1, 0) + 2.0 * dx + _shift(dx, 1, 0)      # vertical [1,2,1]
    dy = _shift(s, 1, 0) - _shift(s, -1, 0)                   # vertical derivative
    gy = _shift(dy, -1, 1) + 2.0 * dy + _shift(dy, 1, 1)      # horizontal [1,2,1]
    return jnp.abs(gx), jnp.abs(gy)


def _edge_minmax_kernel(ilow_ref, ihigh_ref, mm_ref):
    """Call A: per-image min/max of the four |gradient| maps (reference order:
    lowGradx, highGradx, lowGrady, highGrady), packed into a lane-dense
    (8, 128) output block (rows 2g / 2g+1 = min / max of map g)."""
    f32 = jnp.float32
    # SOBEL.expand(C, C, 3, 3) makes every output channel the Sobel response of
    # the channel sum, so one (H, W) map per image is exact.
    s_low = jnp.sum(ilow_ref[0].astype(f32), axis=0)
    s_high = jnp.sum(ihigh_ref[0].astype(f32), axis=0)
    gxl, gyl = _sobel_abs_maps(s_low)
    gxh, gyh = _sobel_abs_maps(s_high)

    row = jax.lax.broadcasted_iota(jnp.int32, (8, 128), 0)
    out = jnp.zeros((8, 128), f32)
    for g, gr in enumerate((gxl, gxh, gyl, gyh)):
        out = jnp.where(row == 2 * g, jnp.min(gr), out)
        out = jnp.where(row == 2 * g + 1, jnp.max(gr), out)
    mm_ref[0] = out


def _edge_sum_kernel(stats_ref, ilow_ref, ihigh_ref, out_ref):
    """Call B: normalize with the 8 global scalars (SMEM, scalar prefetch) and
    emit the per-image sum of Mx*exp(-10*Mx) + My*exp(-10*My)."""
    f32 = jnp.float32
    s_low = jnp.sum(ilow_ref[0].astype(f32), axis=0)
    s_high = jnp.sum(ihigh_ref[0].astype(f32), axis=0)
    gxl, gyl = _sobel_abs_maps(s_low)
    gxh, gyh = _sobel_abs_maps(s_high)

    def norm(g, idx):
        gmin = stats_ref[idx]
        gmax = stats_ref[4 + idx]
        return (g - gmin) / (gmax - gmin + 0.0001)

    mx = norm(gxl, 0) + norm(gxh, 1)
    x_term = jnp.sum(mx * jnp.exp(-10.0 * mx))
    my = norm(gyl, 2) + norm(gyh, 3)
    y_term = jnp.sum(my * jnp.exp(-10.0 * my))
    out_ref[...] = jnp.broadcast_to(x_term + y_term, out_ref.shape)


# --------------------------------------------------------------------------
# Wrapper
# --------------------------------------------------------------------------
def retinex_loss(RLow, RHigh, ILow, IHigh, LLow, LHigh):
    """JAX/Pallas equivalent of loss.forward(RLow, RHigh, ILow, IHigh, LLow, LHigh).
    (RHigh is accepted for signature parity; as in the reference forward it is
    never used.)"""
    f32 = jnp.float32
    N, C, H, W = RLow.shape
    CI = ILow.shape[1]
    CIh = IHigh.shape[1]

    # ---- reconstructionLoss + RLoss: one tiled, pipelined L1 kernel --------
    TS, TL = _l1_tiles(H, W, C)
    GH = pl.cdiv(H, TS)
    GW = pl.cdiv(W, TL)
    need_mask = (H % TS != 0) or (W % TL != 0)

    l1_kernel = functools.partial(_l1_sums_kernel, H=H, W=W, TS=TS, TL=TL,
                                  need_mask=need_mask)
    rec_out, rl_out = pl.pallas_call(
        l1_kernel,
        out_shape=(jax.ShapeDtypeStruct((N, GH, TS, TL), f32),
                   jax.ShapeDtypeStruct((N, GH, TS, TL), f32)),
        grid=(N, GH, GW),
        in_specs=[
            pl.BlockSpec((1, CI, TS, TL), lambda n, th, tw: (n, 0, th, tw)),
            pl.BlockSpec((1, C, TS, TL), lambda n, th, tw: (n, 0, th, tw)),
            pl.BlockSpec((1, C, TS, TL), lambda n, th, tw: (n, 0, th, tw)),
            pl.BlockSpec((1, C, TS, TL), lambda n, th, tw: (n, 0, th, tw)),
        ],
        out_specs=(pl.BlockSpec((1, 1, TS, TL), lambda n, th, tw: (n, th, 0, 0)),
                   pl.BlockSpec((1, 1, TS, TL), lambda n, th, tw: (n, th, 0, 0))),
        compiler_params=pltpu.CompilerParams(
            dimension_semantics=("parallel", "parallel", "arbitrary"),
            vmem_limit_bytes=_VMEM_LIMIT),
    )(ILow, RLow, LLow, LHigh)

    n_elem = N * C * H * W
    recLoss = jnp.sum(rec_out) / n_elem
    rLoss = jnp.sum(rl_out) / n_elem

    # ---- edgePreservingLoss -------------------------------------------------
    # TODO(synk): for very large images (>~512^2) the whole-image edge blocks
    # should be row-strip tiled with a 1-row halo to stay inside v7x's 64 MiB
    # VMEM; whole-image blocks are used here for simplicity.
    mm = pl.pallas_call(
        _edge_minmax_kernel,
        out_shape=jax.ShapeDtypeStruct((N, 8, 128), f32),
        grid=(N,),
        in_specs=[pl.BlockSpec((1, CI, H, W), lambda n: (n, 0, 0, 0)),
                  pl.BlockSpec((1, CIh, H, W), lambda n: (n, 0, 0, 0))],
        out_specs=pl.BlockSpec((1, 8, 128), lambda n: (n, 0, 0)),
        compiler_params=pltpu.CompilerParams(
            dimension_semantics=("parallel",),
            vmem_limit_bytes=_VMEM_LIMIT),
    )(ILow, IHigh)

    # global (whole-batch) min/max per gradient map, as in the torch reference
    mins = jnp.min(mm[:, 0::2, 0], axis=0)          # (4,)
    maxs = jnp.max(mm[:, 1::2, 0], axis=0)          # (4,)
    stats = jnp.concatenate([mins, maxs]).astype(f32)   # (8,) -> SMEM via prefetch

    edge_out = pl.pallas_call(
        _edge_sum_kernel,
        out_shape=jax.ShapeDtypeStruct((N, 8, 128), f32),
        grid_spec=pltpu.PrefetchScalarGridSpec(
            num_scalar_prefetch=1,
            grid=(N,),
            in_specs=[pl.BlockSpec((1, CI, H, W), lambda n, s: (n, 0, 0, 0)),
                      pl.BlockSpec((1, CIh, H, W), lambda n, s: (n, 0, 0, 0))],
            out_specs=pl.BlockSpec((1, 8, 128), lambda n, s: (n, 0, 0))),
        compiler_params=pltpu.CompilerParams(
            dimension_semantics=("parallel",),
            vmem_limit_bytes=_VMEM_LIMIT),
    )(stats, ILow, IHigh)
    # torch means over (N, C_I, H, W); all C_I output channels are identical,
    # so dividing the single-channel sum by N*H*W gives the same mean.
    edgeLoss = jnp.sum(edge_out[:, 0, 0]) / (N * H * W)

    # TODO(synk): VggLoss requires a pretrained Vgg16 checkpoint loaded from
    # '../Utils/vgg16.weight'; no in-script equivalent, contributes 0 here.
    vggLoss = jnp.float32(0.0)

    Loss = 0.3 * recLoss + 0.5 * rLoss + 0.2 * edgeLoss + 0.002 * vggLoss
    components = {'ReconLoss': recLoss, 'RLoss': rLoss,
                  'EdgeLoss': edgeLoss, 'VggLoss': vggLoss}
    return Loss, components


if __name__ == "__main__":
    key = jax.random.PRNGKey(0)
    ks = jax.random.split(key, 6)
    N, C, H, W = 2, 3, 16, 128
    RLow = jax.random.uniform(ks[0], (N, C, H, W), jnp.float32)
    RHigh = jax.random.uniform(ks[1], (N, C, H, W), jnp.float32)
    ILow = jax.random.uniform(ks[2], (N, 1, H, W), jnp.float32)
    IHigh = jax.random.uniform(ks[3], (N, 1, H, W), jnp.float32)
    LLow = jax.random.uniform(ks[4], (N, C, H, W), jnp.float32)
    LHigh = jax.random.uniform(ks[5], (N, C, H, W), jnp.float32)

    total, comps = jax.jit(retinex_loss)(RLow, RHigh, ILow, IHigh, LLow, LHigh)
    jax.block_until_ready(total)
    print("KERNEL_OK")
</pallas_src>

<mosaic_0001>
module attributes {stable_mosaic.version = 11 : i64} {
  func.func @_l1_sums_kernel(%arg0: i32, %arg1: i32, %arg2: i32, %arg3: memref<1x1x16x128xf32, #tpu.memory_space<vmem>>, %arg4: memref<1x3x16x128xf32, #tpu.memory_space<vmem>>, %arg5: memref<1x3x16x128xf32, #tpu.memory_space<vmem>>, %arg6: memref<1x3x16x128xf32, #tpu.memory_space<vmem>>, %arg7: memref<1x1x16x128xf32, #tpu.memory_space<vmem>>, %arg8: memref<1x1x16x128xf32, #tpu.memory_space<vmem>>) attributes {dimension_semantics = [#tpu.dimension_semantics<parallel>, #tpu.dimension_semantics<parallel>, #tpu.dimension_semantics<arbitrary>], iteration_bounds = array<i64: 2, 1, 1>, scalar_prefetch = 0 : i64, scratch_operands = 0 : i64, tpu.core_type = #tpu.core_type<tc>, window_params = [{transform_indices = @transform_0, window_bounds = array<i64: 1, 1, 16, 128>}, {transform_indices = @transform_1, window_bounds = array<i64: 1, 3, 16, 128>}, {transform_indices = @transform_2, window_bounds = array<i64: 1, 3, 16, 128>}, {transform_indices = @transform_3, window_bounds = array<i64: 1, 3, 16, 128>}, {transform_indices = @transform_4, window_bounds = array<i64: 1, 1, 16, 128>}, {transform_indices = @transform_5, window_bounds = array<i64: 1, 1, 16, 128>}]} {
    %c0_i32 = arith.constant 0 : i32
    %0 = arith.cmpi eq, %arg2, %c0_i32 : i32
    %1 = arith.extui %0 : i1 to i32
    %c0_i32_0 = arith.constant 0 : i32
    %2 = arith.cmpi ne, %1, %c0_i32_0 : i32
    scf.if %2 {
      %cst_33 = arith.constant 0.000000e+00 : f32
      %23 = vector.broadcast %cst_33 : f32 to vector<1x1x16x128xf32>
      %c0_34 = arith.constant 0 : index
      %c0_35 = arith.constant 0 : index
      %c0_36 = arith.constant 0 : index
      %c0_37 = arith.constant 0 : index
      %24 = vector.load %arg7[%c0_34, %c0_35, %c0_36, %c0_37] : memref<1x1x16x128xf32, #tpu.memory_space<vmem>>, vector<1x1x16x128xf32>
      tpu.vector_store %arg7[%c0_34, %c0_35, %c0_36, %c0_37], %23 {strides = array<i32>} : memref<1x1x16x128xf32, #tpu.memory_space<vmem>>, vector<1x1x16x128xf32>,
      %cst_38 = arith.constant 0.000000e+00 : f32
      %25 = vector.broadcast %cst_38 : f32 to vector<1x1x16x128xf32>
      %c0_39 = arith.constant 0 : index
      %c0_40 = arith.constant 0 : index
      %c0_41 = arith.constant 0 : index
      %c0_42 = arith.constant 0 : index
      %26 = vector.load %arg8[%c0_39, %c0_40, %c0_41, %c0_42] : memref<1x1x16x128xf32, #tpu.memory_space<vmem>>, vector<1x1x16x128xf32>
      tpu.vector_store %arg8[%c0_39, %c0_40, %c0_41, %c0_42], %25 {strides = array<i32>} : memref<1x1x16x128xf32, #tpu.memory_space<vmem>>, vector<1x1x16x128xf32>,
    } else {
    }
    %c0 = arith.constant 0 : index
    %c0_1 = arith.constant 0 : index
    %c0_2 = arith.constant 0 : index
    %c0_3 = arith.constant 0 : index
    %3 = vector.load %arg4[%c0, %c0_1, %c0_2, %c0_3] : memref<1x3x16x128xf32, #tpu.memory_space<vmem>>, vector<1x3x16x128xf32>
    %c0_4 = arith.constant 0 : index
    %c0_5 = arith.constant 0 : index
    %c0_6 = arith.constant 0 : index
    %c0_7 = arith.constant 0 : index
    %4 = vector.load %arg3[%c0_4, %c0_5, %c0_6, %c0_7] : memref<1x1x16x128xf32, #tpu.memory_space<vmem>>, vector<1x1x16x128xf32>
    %5 = vector.broadcast %4 : vector<1x1x16x128xf32> to vector<1x3x16x128xf32>
    %6 = arith.mulf %3, %5 : vector<1x3x16x128xf32>
    %c0_8 = arith.constant 0 : index
    %c0_9 = arith.constant 0 : index
    %c0_10 = arith.constant 0 : index
    %c0_11 = arith.constant 0 : index
    %7 = vector.load %arg5[%c0_8, %c0_9, %c0_10, %c0_11] : memref<1x3x16x128xf32, #tpu.memory_space<vmem>>, vector<1x3x16x128xf32>
    %8 = arith.subf %6, %7 : vector<1x3x16x128xf32>
    %9 = math.absf %8 : vector<1x3x16x128xf32>
    %cst = arith.constant dense<0.000000e+00> : vector<1x16x128xf32>
    %10 = vector.multi_reduction <add>, %9, %cst [1] : vector<1x3x16x128xf32> to vector<1x16x128xf32>
    %11 = vector.shape_cast %10 : vector<1x16x128xf32> to vector<1x1x16x128xf32>
    %c0_12 = arith.constant 0 : index
    %c0_13 = arith.constant 0 : index
    %c0_14 = arith.constant 0 : index
    %c0_15 = arith.constant 0 : index
    %12 = vector.load %arg6[%c0_12, %c0_13, %c0_14, %c0_15] : memref<1x3x16x128xf32, #tpu.memory_space<vmem>>, vector<1x3x16x128xf32>
    %13 = arith.subf %3, %12 : vector<1x3x16x128xf32>
    %14 = math.absf %13 : vector<1x3x16x128xf32>
    %cst_16 = arith.constant dense<0.000000e+00> : vector<1x16x128xf32>
    %15 = vector.multi_reduction <add>, %14, %cst_16 [1] : vector<1x3x16x128xf32> to vector<1x16x128xf32>
    %16 = vector.shape_cast %15 : vector<1x16x128xf32> to vector<1x1x16x128xf32>
    %c0_17 = arith.constant 0 : index
    %c0_18 = arith.constant 0 : index
    %c0_19 = arith.constant 0 : index
    %c0_20 = arith.constant 0 : index
    %17 = vector.load %arg7[%c0_17, %c0_18, %c0_19, %c0_20] : memref<1x1x16x128xf32, #tpu.memory_space<vmem>>, vector<1x1x16x128xf32>
    %18 = arith.addf %17, %11 : vector<1x1x16x128xf32>
    %c0_21 = arith.constant 0 : index
    %c0_22 = arith.constant 0 : index
    %c0_23 = arith.constant 0 : index
    %c0_24 = arith.constant 0 : index
    %19 = vector.load %arg7[%c0_21, %c0_22, %c0_23, %c0_24] : memref<1x1x16x128xf32, #tpu.memory_space<vmem>>, vector<1x1x16x128xf32>
    tpu.vector_store %arg7[%c0_21, %c0_22, %c0_23, %c0_24], %18 {strides = array<i32>} : memref<1x1x16x128xf32, #tpu.memory_space<vmem>>, vector<1x1x16x128xf32>,
    %c0_25 = arith.constant 0 : index
    %c0_26 = arith.constant 0 : index
    %c0_27 = arith.constant 0 : index
    %c0_28 = arith.constant 0 : index
    %20 = vector.load %arg8[%c0_25, %c0_26, %c0_27, %c0_28] : memref<1x1x16x128xf32, #tpu.memory_space<vmem>>, vector<1x1x16x128xf32>
    %21 = arith.addf %20, %16 : vector<1x1x16x128xf32>
    %c0_29 = arith.constant 0 : index
    %c0_30 = arith.constant 0 : index
    %c0_31 = arith.constant 0 : index
    %c0_32 = arith.constant 0 : index
    %22 = vector.load %arg8[%c0_29, %c0_30, %c0_31, %c0_32] : memref<1x1x16x128xf32, #tpu.memory_space<vmem>>, vector<1x1x16x128xf32>
    tpu.vector_store %arg8[%c0_29, %c0_30, %c0_31, %c0_32], %21 {strides = array<i32>} : memref<1x1x16x128xf32, #tpu.memory_space<vmem>>, vector<1x1x16x128xf32>,
    return
  }
  func.func @transform_0(%arg0: i32, %arg1: i32, %arg2: i32) -> (i32, i32, i32, i32) {
    %c0_i32 = arith.constant 0 : i32
    %c0_i32_0 = arith.constant 0 : i32
    return %arg0, %c0_i32, %arg1, %arg2 : i32, i32, i32, i32
  }
  func.func @transform_1(%arg0: i32, %arg1: i32, %arg2: i32) -> (i32, i32, i32, i32) {
    %c0_i32 = arith.constant 0 : i32
    %c0_i32_0 = arith.constant 0 : i32
    return %arg0, %c0_i32, %arg1, %arg2 : i32, i32, i32, i32
  }
  func.func @transform_2(%arg0: i32, %arg1: i32, %arg2: i32) -> (i32, i32, i32, i32) {
    %c0_i32 = arith.constant 0 : i32
    %c0_i32_0 = arith.constant 0 : i32
    return %arg0, %c0_i32, %arg1, %arg2 : i32, i32, i32, i32
  }
  func.func @transform_3(%arg0: i32, %arg1: i32, %arg2: i32) -> (i32, i32, i32, i32) {
    %c0_i32 = arith.constant 0 : i32
    %c0_i32_0 = arith.constant 0 : i32
    return %arg0, %c0_i32, %arg1, %arg2 : i32, i32, i32, i32
  }
  func.func @transform_4(%arg0: i32, %arg1: i32, %arg2: i32) -> (i32, i32, i32, i32) {
    %c0_i32 = arith.constant 0 : i32
    %c0_i32_0 = arith.constant 0 : i32
    %c0_i32_1 = arith.constant 0 : i32
    return %arg0, %arg1, %c0_i32, %c0_i32_0 : i32, i32, i32, i32
  }
  func.func @transform_5(%arg0: i32, %arg1: i32, %arg2: i32) -> (i32, i32, i32, i32) {
    %c0_i32 = arith.constant 0 : i32
    %c0_i32_0 = arith.constant 0 : i32
    %c0_i32_1 = arith.constant 0 : i32
    return %arg0, %arg1, %c0_i32, %c0_i32_0 : i32, i32, i32, i32
  }
}

module attributes {stable_mosaic.version = 11 : i64} {
  func.func @_edge_minmax_kernel(%arg0: i32, %arg1: memref<1x1x16x128xf32, #tpu.memory_space<vmem>>, %arg2: memref<1x1x16x128xf32, #tpu.memory_space<vmem>>, %arg3: memref<1x8x128xf32, #tpu.memory_space<vmem>>) attributes {dimension_semantics = [#tpu.dimension_semantics<parallel>], iteration_bounds = array<i64: 2>, scalar_prefetch = 0 : i64, scratch_operands = 0 : i64, tpu.core_type = #tpu.core_type<tc>, window_params = [{transform_indices = @transform_0, window_bounds = array<i64: 1, 1, 16, 128>}, {transform_indices = @transform_1, window_bounds = array<i64: 1, 1, 16, 128>}, {transform_indices = @transform_2, window_bounds = array<i64: 1, 8, 128>}]} {
    %c0 = arith.constant 0 : index
    %c0_0 = arith.constant 0 : index
    %c0_1 = arith.constant 0 : index
    %c0_2 = arith.constant 0 : index
    %0 = vector.load %arg1[%c0, %c0_0, %c0_1, %c0_2] : memref<1x1x16x128xf32, #tpu.memory_space<vmem>>, vector<1x1x16x128xf32>
    %1 = vector.shape_cast %0 : vector<1x1x16x128xf32> to vector<1x16x128xf32>
    %cst = arith.constant dense<0.000000e+00> : vector<16x128xf32>
    %2 = vector.multi_reduction <add>, %1, %cst [0] : vector<1x16x128xf32> to vector<16x128xf32>
    %c0_3 = arith.constant 0 : index
    %c0_4 = arith.constant 0 : index
    %c0_5 = arith.constant 0 : index
    %c0_6 = arith.constant 0 : index
    %3 = vector.load %arg2[%c0_3, %c0_4, %c0_5, %c0_6] : memref<1x1x16x128xf32, #tpu.memory_space<vmem>>, vector<1x1x16x128xf32>
    %4 = vector.shape_cast %3 : vector<1x1x16x128xf32> to vector<1x16x128xf32>
    %cst_7 = arith.constant dense<0.000000e+00> : vector<16x128xf32>
    %5 = vector.multi_reduction <add>, %4, %cst_7 [0] : vector<1x16x128xf32> to vector<16x128xf32>
    %c127_i32 = arith.constant 127 : i32
    %6 = tpu.dynamic_rotate %2 by %c127_i32 dim 1 : vector<16x128xf32>, i32 -> vector<16x128xf32>
    %7 = tpu.iota {dimensions = array<i32: 1>} : vector<16x128xi32>
    %c127_i32_8 = arith.constant 127 : i32
    %8 = vector.broadcast %c127_i32_8 : i32 to vector<16x128xi32>
    %9 = arith.cmpi slt, %7, %8 : vector<16x128xi32>
    %cst_9 = arith.constant 0.000000e+00 : f32
    %10 = vector.broadcast %cst_9 : f32 to vector<16x128xf32>
    %11 = arith.select %9, %6, %10 : vector<16x128xi1>, vector<16x128xf32>
    %c1_i32 = arith.constant 1 : i32
    %12 = tpu.dynamic_rotate %2 by %c1_i32 dim 1 : vector<16x128xf32>, i32 -> vector<16x128xf32>
    %13 = tpu.iota {dimensions = array<i32: 1>} : vector<16x128xi32>
    %c1_i32_10 = arith.constant 1 : i32
    %14 = vector.broadcast %c1_i32_10 : i32 to vector<16x128xi32>
    %15 = arith.cmpi sge, %13, %14 : vector<16x128xi32>
    %cst_11 = arith.constant 0.000000e+00 : f32
    %16 = vector.broadcast %cst_11 : f32 to vector<16x128xf32>
    %17 = arith.select %15, %12, %16 : vector<16x128xi1>, vector<16x128xf32>
    %18 = arith.subf %11, %17 : vector<16x128xf32>
    %c1_i32_12 = arith.constant 1 : i32
    %19 = tpu.dynamic_rotate %18 by %c1_i32_12 dim 0 : vector<16x128xf32>, i32 -> vector<16x128xf32>
    %20 = tpu.iota {dimensions = array<i32: 0>} : vector<16x128xi32>
    %c1_i32_13 = arith.constant 1 : i32
    %21 = vector.broadcast %c1_i32_13 : i32 to vector<16x128xi32>
    %22 = arith.cmpi sge, %20, %21 : vector<16x128xi32>
    %cst_14 = arith.constant 0.000000e+00 : f32
    %23 = vector.broadcast %cst_14 : f32 to vector<16x128xf32>
    %24 = arith.select %22, %19, %23 : vector<16x128xi1>, vector<16x128xf32>
    %cst_15 = arith.constant 2.000000e+00 : f32
    %25 = vector.broadcast %cst_15 : f32 to vector<16x128xf32>
    %26 = arith.mulf %25, %18 : vector<16x128xf32>
    %27 = arith.addf %24, %26 : vector<16x128xf32>
    %c15_i32 = arith.constant 15 : i32
    %28 = tpu.dynamic_rotate %18 by %c15_i32 dim 0 : vector<16x128xf32>, i32 -> vector<16x128xf32>
    %29 = tpu.iota {dimensions = array<i32: 0>} : vector<16x128xi32>
    %c15_i32_16 = arith.constant 15 : i32
    %30 = vector.broadcast %c15_i32_16 : i32 to vector<16x128xi32>
    %31 = arith.cmpi slt, %29, %30 : vector<16x128xi32>
    %cst_17 = arith.constant 0.000000e+00 : f32
    %32 = vector.broadcast %cst_17 : f32 to vector<16x128xf32>
    %33 = arith.select %31, %28, %32 : vector<16x128xi1>, vector<16x128xf32>
    %34 = arith.addf %27, %33 : vector<16x128xf32>
    %c15_i32_18 = arith.constant 15 : i32
    %35 = tpu.dynamic_rotate %2 by %c15_i32_18 dim 0 : vector<16x128xf32>, i32 -> vector<16x128xf32>
    %36 = tpu.iota {dimensions = array<i32: 0>} : vector<16x128xi32>
    %c15_i32_19 = arith.constant 15 : i32
    %37 = vector.broadcast %c15_i32_19 : i32 to vector<16x128xi32>
    %38 = arith.cmpi slt, %36, %37 : vector<16x128xi32>
    %cst_20 = arith.constant 0.000000e+00 : f32
    %39 = vector.broadcast %cst_20 : f32 to vector<16x128xf32>
    %40 = arith.select %38, %35, %39 : vector<16x128xi1>, vector<16x128xf32>
    %c1_i32_21 = arith.constant 1 : i32
    %41 = tpu.dynamic_rotate %2 by %c1_i32_21 dim 0 : vector<16x128xf32>, i32 -> vector<16x128xf32>
    %42 = tpu.iota {dimensions = array<i32: 0>} : vector<16x128xi32>
    %c1_i32_22 = arith.constant 1 : i32
    %43 = vector.broadcast %c1_i32_22 : i32 to vector<16x128xi32>
    %44 = arith.cmpi sge, %42, %43 : vector<16x128xi32>
    %cst_23 = arith.constant 0.000000e+00 : f32
    %45 = vector.broadcast %cst_23 : f32 to vector<16x128xf32>
    %46 = arith.select %44, %41, %45 : vector<16x128xi1>, vector<16x128xf32>
    %47 = arith.subf %40, %46 : vector<16x128xf32>
    %c1_i32_24 = arith.constant 1 : i32
    %48 = tpu.dynamic_rotate %47 by %c1_i32_24 dim 1 : vector<16x128xf32>, i32 -> vector<16x128xf32>
    %49 = tpu.iota {dimensions = array<i32: 1>} : vector<16x128xi32>
    %c1_i32_25 = arith.constant 1 : i32
    %50 = vector.broadcast %c1_i32_25 : i32 to vector<16x128xi32>
    %51 = arith.cmpi sge, %49, %50 : vector<16x128xi32>
    %cst_26 = arith.constant 0.000000e+00 : f32
    %52 = vector.broadcast %cst_26 : f32 to vector<16x128xf32>
    %53 = arith.select %51, %48, %52 : vector<16x128xi1>, vector<16x128xf32>
    %cst_27 = arith.constant 2.000000e+00 : f32
    %54 = vector.broadcast %cst_27 : f32 to vector<16x128xf32>
    %55 = arith.mulf %54, %47 : vector<16x128xf32>
    %56 = arith.addf %53, %55 : vector<16x128xf32>
    %c127_i32_28 = arith.constant 127 : i32
    %57 = tpu.dynamic_rotate %47 by %c127_i32_28 dim 1 : vector<16x128xf32>, i32 -> vector<16x128xf32>
    %58 = tpu.iota {dimensions = array<i32: 1>} : vector<16x128xi32>
    %c127_i32_29 = arith.constant 127 : i32
    %59 = vector.broadcast %c127_i32_29 : i32 to vector<16x128xi32>
    %60 = arith.cmpi slt, %58, %59 : vector<16x128xi32>
    %cst_30 = arith.constant 0.000000e+00 : f32
    %61 = vector.broadcast %cst_30 : f32 to vector<16x128xf32>
    %62 = arith.select %60, %57, %61 : vector<16x128xi1>, vector<16x128xf32>
    %63 = arith.addf %56, %62 : vector<16x128xf32>
    %64 = math.absf %34 : vector<16x128xf32>
    %65 = math.absf %63 : vector<16x128xf32>
    %c127_i32_31 = arith.constant 127 : i32
    %66 = tpu.dynamic_rotate %5 by %c127_i32_31 dim 1 : vector<16x128xf32>, i32 -> vector<16x128xf32>
    %67 = tpu.iota {dimensions = array<i32: 1>} : vector<16x128xi32>
    %c127_i32_32 = arith.constant 127 : i32
    %68 = vector.broadcast %c127_i32_32 : i32 to vector<16x128xi32>
    %69 = arith.cmpi slt, %67, %68 : vector<16x128xi32>
    %cst_33 = arith.constant 0.000000e+00 : f32
    %70 = vector.broadcast %cst_33 : f32 to vector<16x128xf32>
    %71 = arith.select %69, %66, %70 : vector<16x128xi1>, vector<16x128xf32>
    %c1_i32_34 = arith.constant 1 : i32
    %72 = tpu.dynamic_rotate %5 by %c1_i32_34 dim 1 : vector<16x128xf32>, i32 -> vector<16x128xf32>
    %73 = tpu.iota {dimensions = array<i32: 1>} : vector<16x128xi32>
    %c1_i32_35 = arith.constant 1 : i32
    %74 = vector.broadcast %c1_i32_35 : i32 to vector<16x128xi32>
    %75 = arith.cmpi sge, %73, %74 : vector<16x128xi32>
    %cst_36 = arith.constant 0.000000e+00 : f32
    %76 = vector.broadcast %cst_36 : f32 to vector<16x128xf32>
    %77 = arith.select %75, %72, %76 : vector<16x128xi1>, vector<16x128xf32>
    %78 = arith.subf %71, %77 : vector<16x128xf32>
    %c1_i32_37 = arith.constant 1 : i32
    %79 = tpu.dynamic_rotate %78 by %c1_i32_37 dim 0 : vector<16x128xf32>, i32 -> vector<16x128xf32>
    %80 = tpu.iota {dimensions = array<i32: 0>} : vector<16x128xi32>
    %c1_i32_38 = arith.constant 1 : i32
    %81 = vector.broadcast %c1_i32_38 : i32 to vector<16x128xi32>
    %82 = arith.cmpi sge, %80, %81 : vector<16x128xi32>
    %cst_39 = arith.constant 0.000000e+00 : f32
    %83 = vector.broadcast %cst_39 : f32 to vector<16x128xf32>
    %84 = arith.select %82, %79, %83 : vector<16x128xi1>, vector<16x128xf32>
    %cst_40 = arith.constant 2.000000e+00 : f32
    %85 = vector.broadcast %cst_40 : f32 to vector<16x128xf32>
    %86 = arith.mulf %85, %78 : vector<16x128xf32>
    %87 = arith.addf %84, %86 : vector<16x128xf32>
    %c15_i32_41 = arith.constant 15 : i32
    %88 = tpu.dynamic_rotate %78 by %c15_i32_41 dim 0 : vector<16x128xf32>, i32 -> vector<16x128xf32>
    %89 = tpu.iota {dimensions = array<i32: 0>} : vector<16x128xi32>
    %c15_i32_42 = arith.constant 15 : i32
    %90 = vector.broadcast %c15_i32_42 : i32 to vector<16x128xi32>
    %91 = arith.cmpi slt, %89, %90 : vector<16x128xi32>
    %cst_43 = arith.constant 0.000000e+00 : f32
    %92 = vector.broadcast %cst_43 : f32 to vector<16x128xf32>
    %93 = arith.select %91, %88, %92 : vector<16x128xi1>, vector<16x128xf32>
    %94 = arith.addf %87, %93 : vector<16x128xf32>
    %c15_i32_44 = arith.constant 15 : i32
    %95 = tpu.dynamic_rotate %5 by %c15_i32_44 dim 0 : vector<16x128xf32>, i32 -> vector<16x128xf32>
    %96 = tpu.iota {dimensions = array<i32: 0>} : vector<16x128xi32>
    %c15_i32_45 = arith.constant 15 : i32
    %97 = vector.broadcast %c15_i32_45 : i32 to vector<16x128xi32>
    %98 = arith.cmpi slt, %96, %97 : vector<16x128xi32>
    %cst_46 = arith.constant 0.000000e+00 : f32
    %99 = vector.broadcast %cst_46 : f32 to vector<16x128xf32>
    %100 = arith.select %98, %95, %99 : vector<16x128xi1>, vector<16x128xf32>
    %c1_i32_47 = arith.constant 1 : i32
    %101 = tpu.dynamic_rotate %5 by %c1_i32_47 dim 0 : vector<16x128xf32>, i32 -> vector<16x128xf32>
    %102 = tpu.iota {dimensions = array<i32: 0>} : vector<16x128xi32>
    %c1_i32_48 = arith.constant 1 : i32
    %103 = vector.broadcast %c1_i32_48 : i32 to vector<16x128xi32>
    %104 = arith.cmpi sge, %102, %103 : vector<16x128xi32>
    %cst_49 = arith.constant 0.000000e+00 : f32
    %105 = vector.broadcast %cst_49 : f32 to vector<16x128xf32>
    %106 = arith.select %104, %101, %105 : vector<16x128xi1>, vector<16x128xf32>
    %107 = arith.subf %100, %106 : vector<16x128xf32>
    %c1_i32_50 = arith.constant 1 : i32
    %108 = tpu.dynamic_rotate %107 by %c1_i32_50 dim 1 : vector<16x128xf32>, i32 -> vector<16x128xf32>
    %109 = tpu.iota {dimensions = array<i32: 1>} : vector<16x128xi32>
    %c1_i32_51 = arith.constant 1 : i32
    %110 = vector.broadcast %c1_i32_51 : i32 to vector<16x128xi32>
    %111 = arith.cmpi sge, %109, %110 : vector<16x128xi32>
    %cst_52 = arith.constant 0.000000e+00 : f32
    %112 = vector.broadcast %cst_52 : f32 to vector<16x128xf32>
    %113 = arith.select %111, %108, %112 : vector<16x128xi1>, vector<16x128xf32>
    %cst_53 = arith.constant 2.000000e+00 : f32
    %114 = vector.broadcast %cst_53 : f32 to vector<16x128xf32>
    %115 = arith.mulf %114, %107 : vector<16x128xf32>
    %116 = arith.addf %113, %115 : vector<16x128xf32>
    %c127_i32_54 = arith.constant 127 : i32
    %117 = tpu.dynamic_rotate %107 by %c127_i32_54 dim 1 : vector<16x128xf32>, i32 -> vector<16x128xf32>
    %118 = tpu.iota {dimensions = array<i32: 1>} : vector<16x128xi32>
    %c127_i32_55 = arith.constant 127 : i32
    %119 = vector.broadcast %c127_i32_55 : i32 to vector<16x128xi32>
    %120 = arith.cmpi slt, %118, %119 : vector<16x128xi32>
    %cst_56 = arith.constant 0.000000e+00 : f32
    %121 = vector.broadcast %cst_56 : f32 to vector<16x128xf32>
    %122 = arith.select %120, %117, %121 : vector<16x128xi1>, vector<16x128xf32>
    %123 = arith.addf %116, %122 : vector<16x128xf32>
    %124 = math.absf %94 : vector<16x128xf32>
    %125 = math.absf %123 : vector<16x128xf32>
    %126 = tpu.iota {dimensions = array<i32: 0>} : vector<8x128xi32>
    %cst_57 = arith.constant 0.000000e+00 : f32
    %127 = vector.broadcast %cst_57 : f32 to vector<8x128xf32>
    %c0_i32 = arith.constant 0 : i32
    %128 = vector.broadcast %c0_i32 : i32 to vector<8x128xi32>
    %129 = arith.cmpi eq, %126, %128 : vector<8x128xi32>
    %130 = vector.shape_cast %64 : vector<16x128xf32> to vector<1x16x128xf32>
    %cst_58 = arith.constant dense<0x7F800000> : vector<1xf32>
    %131 = vector.multi_reduction <minimumf>, %130, %cst_58 [1, 2] : vector<1x16x128xf32> to vector<1xf32>
    %132 = vector.shape_cast %131 : vector<1xf32> to vector<1x1x1xf32>
    %133 = vector.extract %132[0, 0, 0] : f32 from vector<1x1x1xf32>
    %134 = vector.broadcast %133 : f32 to vector<8x128xf32>
    %135 = arith.select %129, %134, %127 : vector<8x128xi1>, vector<8x128xf32>
    %c1_i32_59 = arith.constant 1 : i32
    %136 = vector.broadcast %c1_i32_59 : i32 to vector<8x128xi32>
    %137 = arith.cmpi eq, %126, %136 : vector<8x128xi32>
    %138 = vector.shape_cast %64 : vector<16x128xf32> to vector<1x16x128xf32>
    %cst_60 = arith.constant dense<0xFF800000> : vector<1xf32>
    %139 = vector.multi_reduction <maximumf>, %138, %cst_60 [1, 2] : vector<1x16x128xf32> to vector<1xf32>
    %140 = vector.shape_cast %139 : vector<1xf32> to vector<1x1x1xf32>
    %141 = vector.extract %140[0, 0, 0] : f32 from vector<1x1x1xf32>
    %142 = vector.broadcast %141 : f32 to vector<8x128xf32>
    %143 = arith.select %137, %142, %135 : vector<8x128xi1>, vector<8x128xf32>
    %c2_i32 = arith.constant 2 : i32
    %144 = vector.broadcast %c2_i32 : i32 to vector<8x128xi32>
    %145 = arith.cmpi eq, %126, %144 : vector<8x128xi32>
    %146 = vector.shape_cast %124 : vector<16x128xf32> to vector<1x16x128xf32>
    %cst_61 = arith.constant dense<0x7F800000> : vector<1xf32>
    %147 = vector.multi_reduction <minimumf>, %146, %cst_61 [1, 2] : vector<1x16x128xf32> to vector<1xf32>
    %148 = vector.shape_cast %147 : vector<1xf32> to vector<1x1x1xf32>
    %149 = vector.extract %148[0, 0, 0] : f32 from vector<1x1x1xf32>
    %150 = vector.broadcast %149 : f32 to vector<8x128xf32>
    %151 = arith.select %145, %150, %143 : vector<8x128xi1>, vector<8x128xf32>
    %c3_i32 = arith.constant 3 : i32
    %152 = vector.broadcast %c3_i32 : i32 to vector<8x128xi32>
    %153 = arith.cmpi eq, %126, %152 : vector<8x128xi32>
    %154 = vector.shape_cast %124 : vector<16x128xf32> to vector<1x16x128xf32>
    %cst_62 = arith.constant dense<0xFF800000> : vector<1xf32>
    %155 = vector.multi_reduction <maximumf>, %154, %cst_62 [1, 2] : vector<1x16x128xf32> to vector<1xf32>
    %156 = vector.shape_cast %155 : vector<1xf32> to vector<1x1x1xf32>
    %157 = vector.extract %156[0, 0, 0] : f32 from vector<1x1x1xf32>
    %158 = vector.broadcast %157 : f32 to vector<8x128xf32>
    %159 = arith.select %153, %158, %151 : vector<8x128xi1>, vector<8x128xf32>
    %c4_i32 = arith.constant 4 : i32
    %160 = vector.broadcast %c4_i32 : i32 to vector<8x128xi32>
    %161 = arith.cmpi eq, %126, %160 : vector<8x128xi32>
    %162 = vector.shape_cast %65 : vector<16x128xf32> to vector<1x16x128xf32>
    %cst_63 = arith.constant dense<0x7F800000> : vector<1xf32>
    %163 = vector.multi_reduction <minimumf>, %162, %cst_63 [1, 2] : vector<1x16x128xf32> to vector<1xf32>
    %164 = vector.shape_cast %163 : vector<1xf32> to vector<1x1x1xf32>
    %165 = vector.extract %164[0, 0, 0] : f32 from vector<1x1x1xf32>
    %166 = vector.broadcast %165 : f32 to vector<8x128xf32>
    %167 = arith.select %161, %166, %159 : vector<8x128xi1>, vector<8x128xf32>
    %c5_i32 = arith.constant 5 : i32
    %168 = vector.broadcast %c5_i32 : i32 to vector<8x128xi32>
    %169 = arith.cmpi eq, %126, %168 : vector<8x128xi32>
    %170 = vector.shape_cast %65 : vector<16x128xf32> to vector<1x16x128xf32>
    %cst_64 = arith.constant dense<0xFF800000> : vector<1xf32>
    %171 = vector.multi_reduction <maximumf>, %170, %cst_64 [1, 2] : vector<1x16x128xf32> to vector<1xf32>
    %172 = vector.shape_cast %171 : vector<1xf32> to vector<1x1x1xf32>
    %173 = vector.extract %172[0, 0, 0] : f32 from vector<1x1x1xf32>
    %174 = vector.broadcast %173 : f32 to vector<8x128xf32>
    %175 = arith.select %169, %174, %167 : vector<8x128xi1>, vector<8x128xf32>
    %c6_i32 = arith.constant 6 : i32
    %176 = vector.broadcast %c6_i32 : i32 to vector<8x128xi32>
    %177 = arith.cmpi eq, %126, %176 : vector<8x128xi32>
    %178 = vector.shape_cast %125 : vector<16x128xf32> to vector<1x16x128xf32>
    %cst_65 = arith.constant dense<0x7F800000> : vector<1xf32>
    %179 = vector.multi_reduction <minimumf>, %178, %cst_65 [1, 2] : vector<1x16x128xf32> to vector<1xf32>
    %180 = vector.shape_cast %179 : vector<1xf32> to vector<1x1x1xf32>
    %181 = vector.extract %180[0, 0, 0] : f32 from vector<1x1x1xf32>
    %182 = vector.broadcast %181 : f32 to vector<8x128xf32>
    %183 = arith.select %177, %182, %175 : vector<8x128xi1>, vector<8x128xf32>
    %c7_i32 = arith.constant 7 : i32
    %184 = vector.broadcast %c7_i32 : i32 to vector<8x128xi32>
    %185 = arith.cmpi eq, %126, %184 : vector<8x128xi32>
    %186 = vector.shape_cast %125 : vector<16x128xf32> to vector<1x16x128xf32>
    %cst_66 = arith.constant dense<0xFF800000> : vector<1xf32>
    %187 = vector.multi_reduction <maximumf>, %186, %cst_66 [1, 2] : vector<1x16x128xf32> to vector<1xf32>
    %188 = vector.shape_cast %187 : vector<1xf32> to vector<1x1x1xf32>
    %189 = vector.extract %188[0, 0, 0] : f32 from vector<1x1x1xf32>
    %190 = vector.broadcast %189 : f32 to vector<8x128xf32>
    %191 = arith.select %185, %190, %183 : vector<8x128xi1>, vector<8x128xf32>
    %c0_67 = arith.constant 0 : index
    %c0_68 = arith.constant 0 : index
    %c0_69 = arith.constant 0 : index
    %192 = vector.load %arg3[%c0_67, %c0_68, %c0_69] : memref<1x8x128xf32, #tpu.memory_space<vmem>>, vector<1x8x128xf32>
    %193 = vector.shape_cast %192 : vector<1x8x128xf32> to vector<8x128xf32>
    %194 = vector.shape_cast %191 : vector<8x128xf32> to vector<1x8x128xf32>
    tpu.vector_store %arg3[%c0_67, %c0_68, %c0_69], %194 {strides = array<i32>} : memref<1x8x128xf32, #tpu.memory_space<vmem>>, vector<1x8x128xf32>,
    return
  }
  func.func @transform_0(%arg0: i32) -> (i32, i32, i32, i32) {
    %c0_i32 = arith.constant 0 : i32
    %c0_i32_0 = arith.constant 0 : i32
    %c0_i32_1 = arith.constant 0 : i32
    %c0_i32_2 = arith.constant 0 : i32
    return %arg0, %c0_i32, %c0_i32_0, %c0_i32_1 : i32, i32, i32, i32
  }
  func.func @transform_1(%arg0: i32) -> (i32, i32, i32, i32) {
    %c0_i32 = arith.constant 0 : i32
    %c0_i32_0 = arith.constant 0 : i32
    %c0_i32_1 = arith.constant 0 : i32
    %c0_i32_2 = arith.constant 0 : i32
    return %arg0, %c0_i32, %c0_i32_0, %c0_i32_1 : i32, i32, i32, i32
  }
  func.func @transform_2(%arg0: i32) -> (i32, i32, i32) {
    %c0_i32 = arith.constant 0 : i32
    %c0_i32_0 = arith.constant 0 : i32
    %c0_i32_1 = arith.constant 0 : i32
    return %arg0, %c0_i32, %c0_i32_0 : i32, i32, i32
  }
}

module attributes {stable_mosaic.version = 11 : i64} {
  func.func @_edge_sum_kernel(%arg0: i32, %arg1: memref<8xf32, #tpu.memory_space<smem>>, %arg2: memref<1x1x16x128xf32, #tpu.memory_space<vmem>>, %arg3: memref<1x1x16x128xf32, #tpu.memory_space<vmem>>, %arg4: memref<1x8x128xf32, #tpu.memory_space<vmem>>) attributes {dimension_semantics = [#tpu.dimension_semantics<parallel>], iteration_bounds = array<i64: 2>, scalar_prefetch = 1 : i64, scratch_operands = 0 : i64, tpu.core_type = #tpu.core_type<tc>, window_params = [{transform_indices = @transform_0, window_bounds = array<i64: 1, 1, 16, 128>}, {transform_indices = @transform_1, window_bounds = array<i64: 1, 1, 16, 128>}, {transform_indices = @transform_2, window_bounds = array<i64: 1, 8, 128>}]} {
    %c0 = arith.constant 0 : index
    %c0_0 = arith.constant 0 : index
    %c0_1 = arith.constant 0 : index
    %c0_2 = arith.constant 0 : index
    %0 = vector.load %arg2[%c0, %c0_0, %c0_1, %c0_2] : memref<1x1x16x128xf32, #tpu.memory_space<vmem>>, vector<1x1x16x128xf32>
    %1 = vector.shape_cast %0 : vector<1x1x16x128xf32> to vector<1x16x128xf32>
    %cst = arith.constant dense<0.000000e+00> : vector<16x128xf32>
    %2 = vector.multi_reduction <add>, %1, %cst [0] : vector<1x16x128xf32> to vector<16x128xf32>
    %c0_3 = arith.constant 0 : index
    %c0_4 = arith.constant 0 : index
    %c0_5 = arith.constant 0 : index
    %c0_6 = arith.constant 0 : index
    %3 = vector.load %arg3[%c0_3, %c0_4, %c0_5, %c0_6] : memref<1x1x16x128xf32, #tpu.memory_space<vmem>>, vector<1x1x16x128xf32>
    %4 = vector.shape_cast %3 : vector<1x1x16x128xf32> to vector<1x16x128xf32>
    %cst_7 = arith.constant dense<0.000000e+00> : vector<16x128xf32>
    %5 = vector.multi_reduction <add>, %4, %cst_7 [0] : vector<1x16x128xf32> to vector<16x128xf32>
    %c127_i32 = arith.constant 127 : i32
    %6 = tpu.dynamic_rotate %2 by %c127_i32 dim 1 : vector<16x128xf32>, i32 -> vector<16x128xf32>
    %7 = tpu.iota {dimensions = array<i32: 1>} : vector<16x128xi32>
    %c127_i32_8 = arith.constant 127 : i32
    %8 = vector.broadcast %c127_i32_8 : i32 to vector<16x128xi32>
    %9 = arith.cmpi slt, %7, %8 : vector<16x128xi32>
    %cst_9 = arith.constant 0.000000e+00 : f32
    %10 = vector.broadcast %cst_9 : f32 to vector<16x128xf32>
    %11 = arith.select %9, %6, %10 : vector<16x128xi1>, vector<16x128xf32>
    %c1_i32 = arith.constant 1 : i32
    %12 = tpu.dynamic_rotate %2 by %c1_i32 dim 1 : vector<16x128xf32>, i32 -> vector<16x128xf32>
    %13 = tpu.iota {dimensions = array<i32: 1>} : vector<16x128xi32>
    %c1_i32_10 = arith.constant 1 : i32
    %14 = vector.broadcast %c1_i32_10 : i32 to vector<16x128xi32>
    %15 = arith.cmpi sge, %13, %14 : vector<16x128xi32>
    %cst_11 = arith.constant 0.000000e+00 : f32
    %16 = vector.broadcast %cst_11 : f32 to vector<16x128xf32>
    %17 = arith.select %15, %12, %16 : vector<16x128xi1>, vector<16x128xf32>
    %18 = arith.subf %11, %17 : vector<16x128xf32>
    %c1_i32_12 = arith.constant 1 : i32
    %19 = tpu.dynamic_rotate %18 by %c1_i32_12 dim 0 : vector<16x128xf32>, i32 -> vector<16x128xf32>
    %20 = tpu.iota {dimensions = array<i32: 0>} : vector<16x128xi32>
    %c1_i32_13 = arith.constant 1 : i32
    %21 = vector.broadcast %c1_i32_13 : i32 to vector<16x128xi32>
    %22 = arith.cmpi sge, %20, %21 : vector<16x128xi32>
    %cst_14 = arith.constant 0.000000e+00 : f32
    %23 = vector.broadcast %cst_14 : f32 to vector<16x128xf32>
    %24 = arith.select %22, %19, %23 : vector<16x128xi1>, vector<16x128xf32>
    %cst_15 = arith.constant 2.000000e+00 : f32
    %25 = vector.broadcast %cst_15 : f32 to vector<16x128xf32>
    %26 = arith.mulf %25, %18 : vector<16x128xf32>
    %27 = arith.addf %24, %26 : vector<16x128xf32>
    %c15_i32 = arith.constant 15 : i32
    %28 = tpu.dynamic_rotate %18 by %c15_i32 dim 0 : vector<16x128xf32>, i32 -> vector<16x128xf32>
    %29 = tpu.iota {dimensions = array<i32: 0>} : vector<16x128xi32>
    %c15_i32_16 = arith.constant 15 : i32
    %30 = vector.broadcast %c15_i32_16 : i32 to vector<16x128xi32>
    %31 = arith.cmpi slt, %29, %30 : vector<16x128xi32>
    %cst_17 = arith.constant 0.000000e+00 : f32
    %32 = vector.broadcast %cst_17 : f32 to vector<16x128xf32>
    %33 = arith.select %31, %28, %32 : vector<16x128xi1>, vector<16x128xf32>
    %34 = arith.addf %27, %33 : vector<16x128xf32>
    %c15_i32_18 = arith.constant 15 : i32
    %35 = tpu.dynamic_rotate %2 by %c15_i32_18 dim 0 : vector<16x128xf32>, i32 -> vector<16x128xf32>
    %36 = tpu.iota {dimensions = array<i32: 0>} : vector<16x128xi32>
    %c15_i32_19 = arith.constant 15 : i32
    %37 = vector.broadcast %c15_i32_19 : i32 to vector<16x128xi32>
    %38 = arith.cmpi slt, %36, %37 : vector<16x128xi32>
    %cst_20 = arith.constant 0.000000e+00 : f32
    %39 = vector.broadcast %cst_20 : f32 to vector<16x128xf32>
    %40 = arith.select %38, %35, %39 : vector<16x128xi1>, vector<16x128xf32>
    %c1_i32_21 = arith.constant 1 : i32
    %41 = tpu.dynamic_rotate %2 by %c1_i32_21 dim 0 : vector<16x128xf32>, i32 -> vector<16x128xf32>
    %42 = tpu.iota {dimensions = array<i32: 0>} : vector<16x128xi32>
    %c1_i32_22 = arith.constant 1 : i32
    %43 = vector.broadcast %c1_i32_22 : i32 to vector<16x128xi32>
    %44 = arith.cmpi sge, %42, %43 : vector<16x128xi32>
    %cst_23 = arith.constant 0.000000e+00 : f32
    %45 = vector.broadcast %cst_23 : f32 to vector<16x128xf32>
    %46 = arith.select %44, %41, %45 : vector<16x128xi1>, vector<16x128xf32>
    %47 = arith.subf %40, %46 : vector<16x128xf32>
    %c1_i32_24 = arith.constant 1 : i32
    %48 = tpu.dynamic_rotate %47 by %c1_i32_24 dim 1 : vector<16x128xf32>, i32 -> vector<16x128xf32>
    %49 = tpu.iota {dimensions = array<i32: 1>} : vector<16x128xi32>
    %c1_i32_25 = arith.constant 1 : i32
    %50 = vector.broadcast %c1_i32_25 : i32 to vector<16x128xi32>
    %51 = arith.cmpi sge, %49, %50 : vector<16x128xi32>
    %cst_26 = arith.constant 0.000000e+00 : f32
    %52 = vector.broadcast %cst_26 : f32 to vector<16x128xf32>
    %53 = arith.select %51, %48, %52 : vector<16x128xi1>, vector<16x128xf32>
    %cst_27 = arith.constant 2.000000e+00 : f32
    %54 = vector.broadcast %cst_27 : f32 to vector<16x128xf32>
    %55 = arith.mulf %54, %47 : vector<16x128xf32>
    %56 = arith.addf %53, %55 : vector<16x128xf32>
    %c127_i32_28 = arith.constant 127 : i32
    %57 = tpu.dynamic_rotate %47 by %c127_i32_28 dim 1 : vector<16x128xf32>, i32 -> vector<16x128xf32>
    %58 = tpu.iota {dimensions = array<i32: 1>} : vector<16x128xi32>
    %c127_i32_29 = arith.constant 127 : i32
    %59 = vector.broadcast %c127_i32_29 : i32 to vector<16x128xi32>
    %60 = arith.cmpi slt, %58, %59 : vector<16x128xi32>
    %cst_30 = arith.constant 0.000000e+00 : f32
    %61 = vector.broadcast %cst_30 : f32 to vector<16x128xf32>
    %62 = arith.select %60, %57, %61 : vector<16x128xi1>, vector<16x128xf32>
    %63 = arith.addf %56, %62 : vector<16x128xf32>
    %64 = math.absf %34 : vector<16x128xf32>
    %65 = math.absf %63 : vector<16x128xf32>
    %c127_i32_31 = arith.constant 127 : i32
    %66 = tpu.dynamic_rotate %5 by %c127_i32_31 dim 1 : vector<16x128xf32>, i32 -> vector<16x128xf32>
    %67 = tpu.iota {dimensions = array<i32: 1>} : vector<16x128xi32>
    %c127_i32_32 = arith.constant 127 : i32
    %68 = vector.broadcast %c127_i32_32 : i32 to vector<16x128xi32>
    %69 = arith.cmpi slt, %67, %68 : vector<16x128xi32>
    %cst_33 = arith.constant 0.000000e+00 : f32
    %70 = vector.broadcast %cst_33 : f32 to vector<16x128xf32>
    %71 = arith.select %69, %66, %70 : vector<16x128xi1>, vector<16x128xf32>
    %c1_i32_34 = arith.constant 1 : i32
    %72 = tpu.dynamic_rotate %5 by %c1_i32_34 dim 1 : vector<16x128xf32>, i32 -> vector<16x128xf32>
    %73 = tpu.iota {dimensions = array<i32: 1>} : vector<16x128xi32>
    %c1_i32_35 = arith.constant 1 : i32
    %74 = vector.broadcast %c1_i32_35 : i32 to vector<16x128xi32>
    %75 = arith.cmpi sge, %73, %74 : vector<16x128xi32>
    %cst_36 = arith.constant 0.000000e+00 : f32
    %76 = vector.broadcast %cst_36 : f32 to vector<16x128xf32>
    %77 = arith.select %75, %72, %76 : vector<16x128xi1>, vector<16x128xf32>
    %78 = arith.subf %71, %77 : vector<16x128xf32>
    %c1_i32_37 = arith.constant 1 : i32
    %79 = tpu.dynamic_rotate %78 by %c1_i32_37 dim 0 : vector<16x128xf32>, i32 -> vector<16x128xf32>
    %80 = tpu.iota {dimensions = array<i32: 0>} : vector<16x128xi32>
    %c1_i32_38 = arith.constant 1 : i32
    %81 = vector.broadcast %c1_i32_38 : i32 to vector<16x128xi32>
    %82 = arith.cmpi sge, %80, %81 : vector<16x128xi32>
    %cst_39 = arith.constant 0.000000e+00 : f32
    %83 = vector.broadcast %cst_39 : f32 to vector<16x128xf32>
    %84 = arith.select %82, %79, %83 : vector<16x128xi1>, vector<16x128xf32>
    %cst_40 = arith.constant 2.000000e+00 : f32
    %85 = vector.broadcast %cst_40 : f32 to vector<16x128xf32>
    %86 = arith.mulf %85, %78 : vector<16x128xf32>
    %87 = arith.addf %84, %86 : vector<16x128xf32>
    %c15_i32_41 = arith.constant 15 : i32
    %88 = tpu.dynamic_rotate %78 by %c15_i32_41 dim 0 : vector<16x128xf32>, i32 -> vector<16x128xf32>
    %89 = tpu.iota {dimensions = array<i32: 0>} : vector<16x128xi32>
    %c15_i32_42 = arith.constant 15 : i32
    %90 = vector.broadcast %c15_i32_42 : i32 to vector<16x128xi32>
    %91 = arith.cmpi slt, %89, %90 : vector<16x128xi32>
    %cst_43 = arith.constant 0.000000e+00 : f32
    %92 = vector.broadcast %cst_43 : f32 to vector<16x128xf32>
    %93 = arith.select %91, %88, %92 : vector<16x128xi1>, vector<16x128xf32>
    %94 = arith.addf %87, %93 : vector<16x128xf32>
    %c15_i32_44 = arith.constant 15 : i32
    %95 = tpu.dynamic_rotate %5 by %c15_i32_44 dim 0 : vector<16x128xf32>, i32 -> vector<16x128xf32>
    %96 = tpu.iota {dimensions = array<i32: 0>} : vector<16x128xi32>
    %c15_i32_45 = arith.constant 15 : i32
    %97 = vector.broadcast %c15_i32_45 : i32 to vector<16x128xi32>
    %98 = arith.cmpi slt, %96, %97 : vector<16x128xi32>
    %cst_46 = arith.constant 0.000000e+00 : f32
    %99 = vector.broadcast %cst_46 : f32 to vector<16x128xf32>
    %100 = arith.select %98, %95, %99 : vector<16x128xi1>, vector<16x128xf32>
    %c1_i32_47 = arith.constant 1 : i32
    %101 = tpu.dynamic_rotate %5 by %c1_i32_47 dim 0 : vector<16x128xf32>, i32 -> vector<16x128xf32>
    %102 = tpu.iota {dimensions = array<i32: 0>} : vector<16x128xi32>
    %c1_i32_48 = arith.constant 1 : i32
    %103 = vector.broadcast %c1_i32_48 : i32 to vector<16x128xi32>
    %104 = arith.cmpi sge, %102, %103 : vector<16x128xi32>
    %cst_49 = arith.constant 0.000000e+00 : f32
    %105 = vector.broadcast %cst_49 : f32 to vector<16x128xf32>
    %106 = arith.select %104, %101, %105 : vector<16x128xi1>, vector<16x128xf32>
    %107 = arith.subf %100, %106 : vector<16x128xf32>
    %c1_i32_50 = arith.constant 1 : i32
    %108 = tpu.dynamic_rotate %107 by %c1_i32_50 dim 1 : vector<16x128xf32>, i32 -> vector<16x128xf32>
    %109 = tpu.iota {dimensions = array<i32: 1>} : vector<16x128xi32>
    %c1_i32_51 = arith.constant 1 : i32
    %110 = vector.broadcast %c1_i32_51 : i32 to vector<16x128xi32>
    %111 = arith.cmpi sge, %109, %110 : vector<16x128xi32>
    %cst_52 = arith.constant 0.000000e+00 : f32
    %112 = vector.broadcast %cst_52 : f32 to vector<16x128xf32>
    %113 = arith.select %111, %108, %112 : vector<16x128xi1>, vector<16x128xf32>
    %cst_53 = arith.constant 2.000000e+00 : f32
    %114 = vector.broadcast %cst_53 : f32 to vector<16x128xf32>
    %115 = arith.mulf %114, %107 : vector<16x128xf32>
    %116 = arith.addf %113, %115 : vector<16x128xf32>
    %c127_i32_54 = arith.constant 127 : i32
    %117 = tpu.dynamic_rotate %107 by %c127_i32_54 dim 1 : vector<16x128xf32>, i32 -> vector<16x128xf32>
    %118 = tpu.iota {dimensions = array<i32: 1>} : vector<16x128xi32>
    %c127_i32_55 = arith.constant 127 : i32
    %119 = vector.broadcast %c127_i32_55 : i32 to vector<16x128xi32>
    %120 = arith.cmpi slt, %118, %119 : vector<16x128xi32>
    %cst_56 = arith.constant 0.000000e+00 : f32
    %121 = vector.broadcast %cst_56 : f32 to vector<16x128xf32>
    %122 = arith.select %120, %117, %121 : vector<16x128xi1>, vector<16x128xf32>
    %123 = arith.addf %116, %122 : vector<16x128xf32>
    %124 = math.absf %94 : vector<16x128xf32>
    %125 = math.absf %123 : vector<16x128xf32>
    %c0_57 = arith.constant 0 : index
    %126 = memref.load %arg1[%c0_57] : memref<8xf32, #tpu.memory_space<smem>>
    %c4 = arith.constant 4 : index
    %127 = memref.load %arg1[%c4] : memref<8xf32, #tpu.memory_space<smem>>
    %128 = vector.broadcast %126 : f32 to vector<16x128xf32>
    %129 = arith.subf %64, %128 : vector<16x128xf32>
    %130 = arith.subf %127, %126 : f32
    %cst_58 = arith.constant 9.99999974E-5 : f32
    %131 = arith.addf %130, %cst_58 : f32
    %132 = vector.broadcast %131 : f32 to vector<16x128xf32>
    %133 = arith.divf %129, %132 : vector<16x128xf32>
    %c1 = arith.constant 1 : index
    %134 = memref.load %arg1[%c1] : memref<8xf32, #tpu.memory_space<smem>>
    %c5 = arith.constant 5 : index
    %135 = memref.load %arg1[%c5] : memref<8xf32, #tpu.memory_space<smem>>
    %136 = vector.broadcast %134 : f32 to vector<16x128xf32>
    %137 = arith.subf %124, %136 : vector<16x128xf32>
    %138 = arith.subf %135, %134 : f32
    %cst_59 = arith.constant 9.99999974E-5 : f32
    %139 = arith.addf %138, %cst_59 : f32
    %140 = vector.broadcast %139 : f32 to vector<16x128xf32>
    %141 = arith.divf %137, %140 : vector<16x128xf32>
    %142 = arith.addf %133, %141 : vector<16x128xf32>
    %cst_60 = arith.constant -1.000000e+01 : f32
    %143 = vector.broadcast %cst_60 : f32 to vector<16x128xf32>
    %144 = arith.mulf %143, %142 : vector<16x128xf32>
    %145 = math.exp %144 : vector<16x128xf32>
    %146 = arith.mulf %142, %145 : vector<16x128xf32>
    %147 = vector.shape_cast %146 : vector<16x128xf32> to vector<1x16x128xf32>
    %cst_61 = arith.constant dense<0.000000e+00> : vector<1xf32>
    %148 = vector.multi_reduction <add>, %147, %cst_61 [1, 2] : vector<1x16x128xf32> to vector<1xf32>
    %149 = vector.shape_cast %148 : vector<1xf32> to vector<1x1x1xf32>
    %150 = vector.extract %149[0, 0, 0] : f32 from vector<1x1x1xf32>
    %c2 = arith.constant 2 : index
    %151 = memref.load %arg1[%c2] : memref<8xf32, #tpu.memory_space<smem>>
    %c6 = arith.constant 6 : index
    %152 = memref.load %arg1[%c6] : memref<8xf32, #tpu.memory_space<smem>>
    %153 = vector.broadcast %151 : f32 to vector<16x128xf32>
    %154 = arith.subf %65, %153 : vector<16x128xf32>
    %155 = arith.subf %152, %151 : f32
    %cst_62 = arith.constant 9.99999974E-5 : f32
    %156 = arith.addf %155, %cst_62 : f32
    %157 = vector.broadcast %156 : f32 to vector<16x128xf32>
    %158 = arith.divf %154, %157 : vector<16x128xf32>
    %c3 = arith.constant 3 : index
    %159 = memref.load %arg1[%c3] : memref<8xf32, #tpu.memory_space<smem>>
    %c7 = arith.constant 7 : index
    %160 = memref.load %arg1[%c7] : memref<8xf32, #tpu.memory_space<smem>>
    %161 = vector.broadcast %159 : f32 to vector<16x128xf32>
    %162 = arith.subf %125, %161 : vector<16x128xf32>
    %163 = arith.subf %160, %159 : f32
    %cst_63 = arith.constant 9.99999974E-5 : f32
    %164 = arith.addf %163, %cst_63 : f32
    %165 = vector.broadcast %164 : f32 to vector<16x128xf32>
    %166 = arith.divf %162, %165 : vector<16x128xf32>
    %167 = arith.addf %158, %166 : vector<16x128xf32>
    %cst_64 = arith.constant -1.000000e+01 : f32
    %168 = vector.broadcast %cst_64 : f32 to vector<16x128xf32>
    %169 = arith.mulf %168, %167 : vector<16x128xf32>
    %170 = math.exp %169 : vector<16x128xf32>
    %171 = arith.mulf %167, %170 : vector<16x128xf32>
    %172 = vector.shape_cast %171 : vector<16x128xf32> to vector<1x16x128xf32>
    %cst_65 = arith.constant dense<0.000000e+00> : vector<1xf32>
    %173 = vector.multi_reduction <add>, %172, %cst_65 [1, 2] : vector<1x16x128xf32> to vector<1xf32>
    %174 = vector.shape_cast %173 : vector<1xf32> to vector<1x1x1xf32>
    %175 = vector.extract %174[0, 0, 0] : f32 from vector<1x1x1xf32>
    %176 = arith.addf %150, %175 : f32
    %177 = vector.broadcast %176 : f32 to vector<1x8x128xf32>
    %c0_66 = arith.constant 0 : index
    %c0_67 = arith.constant 0 : index
    %c0_68 = arith.constant 0 : index
    %178 = vector.load %arg4[%c0_66, %c0_67, %c0_68] : memref<1x8x128xf32, #tpu.memory_space<vmem>>, vector<1x8x128xf32>
    tpu.vector_store %arg4[%c0_66, %c0_67, %c0_68], %177 {strides = array<i32>} : memref<1x8x128xf32, #tpu.memory_space<vmem>>, vector<1x8x128xf32>,
    return
  }
  func.func @transform_0(%arg0: i32, %arg1: memref<8xf32, #tpu.memory_space<smem>>) -> (i32, i32, i32, i32) {
    %c0_i32 = arith.constant 0 : i32
    %c0_i32_0 = arith.constant 0 : i32
    %c0_i32_1 = arith.constant 0 : i32
    %c0_i32_2 = arith.constant 0 : i32
    return %arg0, %c0_i32, %c0_i32_0, %c0_i32_1 : i32, i32, i32, i32
  }
  func.func @transform_1(%arg0: i32, %arg1: memref<8xf32, #tpu.memory_space<smem>>) -> (i32, i32, i32, i32) {
    %c0_i32 = arith.constant 0 : i32
    %c0_i32_0 = arith.constant 0 : i32
    %c0_i32_1 = arith.constant 0 : i32
    %c0_i32_2 = arith.constant 0 : i32
    return %arg0, %c0_i32, %c0_i32_0, %c0_i32_1 : i32, i32, i32, i32
  }
  func.func @transform_2(%arg0: i32, %arg1: memref<8xf32, #tpu.memory_space<smem>>) -> (i32, i32, i32) {
    %c0_i32 = arith.constant 0 : i32
    %c0_i32_0 = arith.constant 0 : i32
    %c0_i32_1 = arith.constant 0 : i32
    return %arg0, %c0_i32, %c0_i32_0 : i32, i32, i32
  }
}

</mosaic_0001>

<bundles_post_ra>
// kernel: retinex_loss.3
= control target key start
LH: loop header
LB: loop body
LE: loop exit
PB: predicated region body
PF: predicated region fallthrough
CT: control target
= control target key end

     0   :  { %s1347_s0 = inlined_call_operand.hbm [shape: f32[2,1,16,128], index: 0, kind: input, shape index: {}]   ;;  %s1348_s1 = inlined_call_operand.hbm [shape: f32[2,3,16,128], index: 1, kind: input, shape index: {}]   ;;  %s1349_s2 = inlined_call_operand.hbm [shape: f32[2,3,16,128], index: 2, kind: input, shape index: {}]   ;;  %s1350_s3 = inlined_call_operand.hbm [shape: f32[2,3,16,128], index: 3, kind: input, shape index: {}]   ;;  %s1351_s4 = inlined_call_operand.vmem [shape: f32[2,1,16,128], index: 4, kind: output, shape index: {0}]   ;;  %s1352_s5 = inlined_call_operand.vmem [shape: f32[2,1,16,128], index: 5, kind: output, shape index: {1}]  }
   0x1   :  { %1356 = sst [smem:[#allocation14_spill]] %s1348_s1 }
   0x2   :  { %11 = vsyncpa [#allocation3], 0 }
   0x3   :  { %13 = vsyncpa [#allocation3 + $0x1], 0 }
   0x4   :  { %14 = vsyncpa [#allocation5], 0 }
   0x5   :  { %16 = vsyncpa [#allocation5 + $0x1], 0 }
   0x6   :  { %17 = vsyncpa [#allocation8], 0 }
   0x7   :  { %19 = vsyncpa [#allocation8 + $0x1], 0  ;;  %s1074_s18 = smov 0   ;;  %s1076_s19 = smov 0  }
   0x8   :  { %s1078_s20 = smov 0   ;;  %s1080_s21 = smov 0  }
   0x9   :  { %s1082_s22 = smov 0   ;;  %s1084_s23 = smov 0  }
   0xa LB: > { %s1354_s24 = sadd.s32 4294967295, %s1036_s23   ;;  %s44_s25 = sadd.s32 1, %s1032_s22  ;;  %s1036_s23 = sphi %s1084_s23, %s25_s23   ;;  %s1032_s22 = sphi %s1082_s22, %s1373_s22   ;;  %s1028_s21 = sphi %s1080_s21, %s1372_s21   ;;  %s1024_s20 = sphi %s1078_s20, %s1371_s20   ;;  %s1020_s19 = sphi %s1076_s19, %s1370_s19   ;;  %s1016_s18 = sphi %s1074_s18, %s1369_s18  }
   0xb   : > { %p46_p0 = scmp.ge.s32.totalorder %s44_s25, 2  ;;  %s55_s26 = sadd.s32 1, %s1024_s20 }
   0xc   : > { %p62_p1 = scmp.ne.s32.totalorder %s1024_s20, %s1020_s19  ;;  %p63_p2 = scmp.eq.s32.totalorder %s1036_s23, 0 }
   0xd   : > { %s1375_s25 = smov (%p46_p0, %s44_s25), 0  ;;  %p68_p4 = scmp.ne.s32.totalorder %s1020_s19, %s1016_s18 }
   0xe   : > { %1357 = sst [smem:[#allocation12_spill]] %s1375_s25  ;;  %p64_p3 = por %p63_p2, %p62_p1 }
   0xf   : > { %s48_s27 = ssub.s32 %s1032_s22, %s1375_s25  ;;  %p69_p5 = scmp.eq.s32.totalorder %s1354_s24, 0 }
  0x10   : > { %p53_p6 = scmp.eq.s32.totalorder %s48_s27, 0  ;;  %p806_p8 = scmp.lt.s32.totalorder %s1036_s23, 2 }
  0x11   : > { %p1115_p7 = por %p69_p5, %p68_p4  ;;  %s1124_s30 = sand.u32 1, %s1024_s20  }
  0x12   : > { %s1121_s29 = scalar_select %p53_p6, %s1024_s20, %s55_s26  }
  0x13   : > { %s1358_s28 = scalar_select %p1115_p7, 1, 0 }
  0x14   : > { %1359 = sst [smem:[#allocation13_spill]] %s1121_s29  ;;  %p1126_p9 = pnand %p806_p8, %p64_p3 }
  0x15   : > { %s262_s7 = sand.u32 1, %s1036_s23   ;;  %s1132_s8 = smul.u32 48, %s1124_s30 }
  0x16   : > { %s1135_s9 = smul.u32 768, %s1032_s22  ;;  %p767_p10 = scmp.ge.s32.totalorder %s1036_s23, 1 }
  0x17   : > { %p332_p11 = scmp.lt.s32.totalorder %s1036_s23, 3  ;;  %s1361_s1 = sld [smem:[#allocation14_spill]] }
  0x18   : > { %s266_s13 = scalar_lea.vmem [#allocation4], %s1132_s8  ;;  %s1152_s16 = scalar_lea.sflag [#allocation5], %s262_s7 }
  0x19   : > { %s276_s14 = sshll.u32 %s266_s13, 4  ;;  %p1148_p12 = pnand %p767_p10, %p332_p11  ;;  %s1146_s14 = int_to_ptr.vmem [resolvable:$true] %s276_s14 }
  0x1a   : > { %p1158_p0 = pneg %p1126_p9 }
  0x1b   : > { %s1362_s15 = scalar_select %p1148_p12, 1, 0 }
  0x1d   : > { %s1143_s12 = scalar_lea.hbm %s1361_s1, %s1135_s9  ;;  %s863_s10 = scalar_lea.hbm %s1361_s1, 1536 }
  0x1e   : > { %s858_s17 = scalar_lea.hbm %s1143_s12, 768  ;;  %p864_p3 = scmp.lt.u32.totalorder %s1143_s12, %s1361_s1 }
  0x1f   : > { %p859_p13 = scmp.ne.s32.totalorder %s1143_s12, %s858_s17  ;;  %p865_p4 = scmp.lt.u32.totalorder %s863_s10, %s858_s17 }
  0x20   : > { %p867_p6 = scmp.lt.u32.totalorder %s858_s17, %s1143_s12 }
  0x21   : > { %p861_p1 = pnand %p1158_p0, %p859_p13  ;;  %p866_p5 = por %p865_p4, %p864_p3 }
  0x23   : > { %p862_p2 = pneg %p861_p1  ;;  %p868_p8 = por %p867_p6, %p866_p5 }
  0x25   : > { %p869_p10 = pnand %p868_p8, %p862_p2 }
  0x27   : > { %872 = shalt.err (!%p869_p10)
}
  0x28   : > { %s873_s7 = scalar_lea.vmem %s1146_s14, 768  ;;  %s1038_s26 = smov [#allocation4]  }
  0x29   : > { %p874_p11 = scmp.ne.s32.totalorder %s1146_s14, %s873_s7  ;;  %s878_s27 = sshll.u32 %s1038_s26, 4  ;;  %s879_s27 = int_to_ptr.vmem [resolvable:$false] %s878_s27 }
  0x2a   : > { %s880_s11 = scalar_lea.vmem %s879_s27, 1536  ;;  %p881_p7 = scmp.lt.s32.totalorder %s1146_s14, %s879_s27 }
  0x2b   : > { %p876_p13 = pnand %p874_p11, %p1158_p0  ;;  %p882_p12 = scmp.lt.s32.totalorder %s880_s11, %s873_s7 }
  0x2d   : > { %p877_p1 = pneg %p876_p13  ;;  %p883_p3 = por %p882_p12, %p881_p7 }
  0x2f   : > { %p884_p4 = pnand %p883_p3, %p877_p1 }
  0x31   : > { %887 = shalt.err (!%p884_p4)
}
  0x32   : > { %s1039_s17 = smov 128   ;;  %s1040_s10 = smov 8  }
  0x33   : > { %799 = dma.hbm_to_vmem [thread:$0]  (!%p1126_p9), %s1143_s12, 768, %s1146_s14, %s1152_s16, %s1039_s17, %s1039_s17, %s1040_s10  }
  0x34   : > { %s761_s13 = sshll.u32 %s1124_s30, 4  ;;  %s775_s7 = sshll.u32 %s1032_s22, 8 }
  0x35   : > { %s1190_s11 = scalar_lea.hbm %s1347_s0, %s775_s7  ;;  %s242_s24 = scalar_lea.vmem [#allocation2], %s761_s13 }
  0x36   : > { %s252_s1 = sshll.u32 %s242_s24, 4  ;;  %s239_s25 = scalar_lea.sflag [#allocation3], %s1124_s30  ;;  %s1192_s1 = int_to_ptr.vmem [resolvable:$true] %s252_s1 }
  0x37   : > { %s888_s29 = scalar_lea.hbm %s1190_s11, 256  ;;  %s893_s26 = scalar_lea.hbm %s1347_s0, 512 }
  0x38   : > { %p889_p7 = scmp.ne.s32.totalorder %s1190_s11, %s888_s29  ;;  %p894_p5 = scmp.lt.u32.totalorder %s1190_s11, %s1347_s0 }
  0x39   : > { %p895_p6 = scmp.lt.u32.totalorder %s893_s26, %s888_s29  ;;  %p897_p10 = scmp.lt.u32.totalorder %s888_s29, %s1190_s11 }
  0x3a   : > { %p891_p12 = pnand %p889_p7, %p1158_p0 }
  0x3b   : > { %p896_p8 = por %p895_p6, %p894_p5 }
  0x3c   : > { %p892_p2 = pneg %p891_p12 }
  0x3d   : > { %p898_p11 = por %p897_p10, %p896_p8 }
  0x3f   : > { %p899_p13 = pnand %p898_p11, %p892_p2 }
  0x41   : > { %902 = shalt.err (!%p899_p13)
}
  0x42   : > { %s903_s24 = scalar_lea.vmem %s1192_s1, 256  ;;  %s1041_s13 = smov [#allocation2]  }
  0x43   : > { %p904_p1 = scmp.ne.s32.totalorder %s1192_s1, %s903_s24  ;;  %s908_s12 = sshll.u32 %s1041_s13, 4  ;;  %s909_s12 = int_to_ptr.vmem [resolvable:$false] %s908_s12 }
  0x44   : > { %s910_s14 = scalar_lea.vmem %s909_s12, 512  ;;  %p911_p7 = scmp.lt.s32.totalorder %s1192_s1, %s909_s12 }
  0x45   : > { %p906_p3 = pnand %p904_p1, %p1158_p0  ;;  %p912_p12 = scmp.lt.s32.totalorder %s910_s14, %s903_s24 }
  0x47   : > { %p907_p4 = pneg %p906_p3  ;;  %p913_p5 = por %p912_p12, %p911_p7 }
  0x49   : > { %p914_p6 = pnand %p913_p5, %p907_p4 }
  0x4b   : > { %917 = shalt.err (!%p914_p6)
}
  0x4c   : > { %796 = dma.hbm_to_vmem [thread:$0]  (!%p1126_p9), %s1190_s11, 256, %s1192_s1, %s239_s25, %s1039_s17, %s1039_s17, %s1040_s10  }
  0x4d   : > { %s1225_s7 = scalar_lea.hbm %s1349_s2, %s1135_s9  ;;  %s290_s27 = scalar_lea.vmem [#allocation6], %s1132_s8 }
  0x4e   : > { %s300_s24 = sshll.u32 %s290_s27, 4  ;;  %s918_s13 = scalar_lea.hbm %s1225_s7, 768  ;;  %s1228_s24 = int_to_ptr.vmem [resolvable:$true] %s300_s24 }
  0x4f   : > { %p919_p2 = scmp.ne.s32.totalorder %s1225_s7, %s918_s13  ;;  %s923_s25 = scalar_lea.hbm %s1349_s2, 1536 }
  0x50   : > { %p924_p11 = scmp.lt.u32.totalorder %s1225_s7, %s1349_s2  ;;  %p925_p13 = scmp.lt.u32.totalorder %s923_s25, %s918_s13 }
  0x51   : > { %p921_p8 = pnand %p919_p2, %p1158_p0  ;;  %p927_p3 = scmp.lt.u32.totalorder %s918_s13, %s1225_s7 }
  0x52   : > { %p926_p1 = por %p925_p13, %p924_p11 }
  0x53   : > { %p922_p10 = pneg %p921_p8 }
  0x54   : > { %p928_p4 = por %p927_p3, %p926_p1 }
  0x56   : > { %p929_p7 = pnand %p928_p4, %p922_p10 }
  0x58   : > { %932 = shalt.err (!%p929_p7)
}
  0x59   : > { %s933_s29 = scalar_lea.vmem %s1228_s24, 768  ;;  %s1042_s26 = smov [#allocation6]  }
  0x5a   : > { %p934_p12 = scmp.ne.s32.totalorder %s1228_s24, %s933_s29  ;;  %s938_s27 = sshll.u32 %s1042_s26, 4  ;;  %s939_s27 = int_to_ptr.vmem [resolvable:$false] %s938_s27 }
  0x5b   : > { %s940_s12 = scalar_lea.vmem %s939_s27, 1536  ;;  %p941_p2 = scmp.lt.s32.totalorder %s1228_s24, %s939_s27 }
  0x5c   : > { %p936_p5 = pnand %p934_p12, %p1158_p0  ;;  %p942_p8 = scmp.lt.s32.totalorder %s940_s12, %s933_s29 }
  0x5e   : > { %p937_p6 = pneg %p936_p5  ;;  %p943_p11 = por %p942_p8, %p941_p2 }
  0x60   : > { %p944_p13 = pnand %p943_p11, %p937_p6 }
  0x62   : > { %947 = shalt.err (!%p944_p13)
}
  0x63   : > { %802 = dma.hbm_to_vmem [thread:$0]  (!%p1126_p9), %s1225_s7, 768, %s1228_s24, %s1152_s16, %s1039_s17, %s1039_s17, %s1040_s10  }
  0x64   : > { %s1259_s25 = scalar_lea.hbm %s1350_s3, %s1135_s9  ;;  %s314_s11 = scalar_lea.vmem [#allocation7], %s1132_s8 }
  0x65   : > { %s324_s14 = sshll.u32 %s314_s11, 4  ;;  %s311_s29 = scalar_lea.sflag [#allocation8], %s1124_s30  ;;  %s1262_s14 = int_to_ptr.vmem [resolvable:$true] %s324_s14 }
  0x66   : > { %s948_s26 = scalar_lea.hbm %s1259_s25, 768  ;;  %s953_s24 = scalar_lea.hbm %s1350_s3, 1536 }
  0x67   : > { %p949_p10 = scmp.ne.s32.totalorder %s1259_s25, %s948_s26  ;;  %p954_p4 = scmp.lt.u32.totalorder %s1259_s25, %s1350_s3 }
  0x68   : > { %p955_p7 = scmp.lt.u32.totalorder %s953_s24, %s948_s26  ;;  %p957_p5 = scmp.lt.u32.totalorder %s948_s26, %s1259_s25 }
  0x69   : > { %p951_p1 = pnand %p949_p10, %p1158_p0 }
  0x6a   : > { %p956_p12 = por %p955_p7, %p954_p4 }
  0x6b   : > { %p952_p3 = pneg %p951_p1 }
  0x6c   : > { %p958_p6 = por %p957_p5, %p956_p12 }
  0x6e   : > { %p959_p2 = pnand %p958_p6, %p952_p3 }
  0x70   : > { %962 = shalt.err (!%p959_p2)
}
  0x71   : > { %s963_s8 = scalar_lea.vmem %s1262_s14, 768  ;;  %s1043_s12 = smov [#allocation7]  }
  0x72   : > { %p964_p8 = scmp.ne.s32.totalorder %s1262_s14, %s963_s8  ;;  %s968_s13 = sshll.u32 %s1043_s12, 4  ;;  %s969_s13 = int_to_ptr.vmem [resolvable:$false] %s968_s13 }
  0x73   : > { %s970_s1 = scalar_lea.vmem %s969_s13, 1536  ;;  %p971_p10 = scmp.lt.s32.totalorder %s1262_s14, %s969_s13 }
  0x74   : > { %p966_p11 = pnand %p964_p8, %p1158_p0  ;;  %p972_p1 = scmp.lt.s32.totalorder %s970_s1, %s963_s8 }
  0x76   : > { %p967_p13 = pneg %p966_p11  ;;  %p973_p4 = por %p972_p1, %p971_p10 }
  0x78   : > { %p974_p7 = pnand %p973_p4, %p967_p13 }
  0x7a   : > { %977 = shalt.err (!%p974_p7)
}
  0x7b   : > { %805 = dma.hbm_to_vmem [thread:$0]  (!%p1126_p9), %s1259_s25, 768, %s1262_s14, %s311_s29, %s1039_s17, %s1039_s17, %s1040_s10  }
  0x7c   : > { %p1364_p0 = scmp.ne.s32.totalorder %s1362_s15, 0 }
  0x7d   : > { %s338_s18 = sand.u32 (!%p1364_p0), 1, %s1020_s19   ;;  %p1365_p3 = scmp.ne.s32.totalorder (!%p1364_p0), %s1358_s28, 0 }
  0x7e   : > { %336 = sbr.rel (%p1364_p0) target bundleno = 158 (0x9e), region = 36  ;;  %s768_s11 = sshll.u32 (!%p1364_p0), %s338_s18, 4 }
  0x7f   : > { %s339_s26 = scalar_lea.sflag (!%p1364_p0), [#allocation3], %s338_s18  ;;  %s342_s16 = scalar_lea.vmem (!%p1364_p0), [#allocation2], %s768_s11 }
  0x85   : > { %1003 = dma.done.wait (%p1365_p3), %s339_s26, 256  }
  0x86   : > { %1005 = vsyncadd (%p1365_p3), %s339_s26, 4294967040  ;;  %s1366_s6 = sadd.s32 4294967295, %s1036_s23   ;;  %s784_s7 = smul.u32 48, %s338_s18 }
  0x87   : > { %s347_s30 = sand.u32 1, %s1366_s6  }
  0x88   : > { %s348_s17 = scalar_lea.sflag [#allocation5], %s347_s30  ;;  %s351_s10 = scalar_lea.vmem [#allocation4], %s784_s7 }
  0x89   : > { %1007 = dma.done.wait (%p1365_p3), %s348_s17, 1536  }
  0x8a   : > { %1009 = vsyncadd (%p1365_p3), %s348_s17, 4294965760  ;;  %s360_s15 = scalar_lea.vmem [#allocation6], %s784_s7  ;;  %s366_s25 = scalar_lea.sflag [#allocation8], %s338_s18 }
  0x8b   : > { %s1304_s14 = scalar_lea.vmem [#allocation7], %s784_s7 }
  0x8c   : > { %1011 = dma.done.wait (%p1365_p3), %s366_s25, 768  }
  0x8d   : > { %1013 = vsyncadd (%p1365_p3), %s366_s25, 4294966528  ;;  %p428_p9 = scmp.lt.s32.totalorder %s1028_s21, 1  ;;  %v454_v0 = vld [vmem:[%s351_s10] sm:$0xff]  ;;  %v456_v1 = vld [vmem:[%s351_s10 + $0x10] sm:$0xff] }
  0x8e   : > { %v458_v2 = vld [vmem:[%s351_s10 + $0x20] sm:$0xff]  ;;  %v470_v5 = vld [vmem:[%s360_s15 + $0x10] sm:$0xff]  ;;  %v455_v10 = vld [vmem:[%s351_s10 + $0x8] sm:$0xff] }
  0x8f   : > { %v460_v3 = vld [vmem:[%s342_s16] sm:$0xff]  ;;  %v457_v11 = vld [vmem:[%s351_s10 + $0x18] sm:$0xff]  ;;  %v459_v12 = vld [vmem:[%s351_s10 + $0x28] sm:$0xff]  ;;  %s1377_s21 = smov (!%p428_p9, %s1028_s21), 1 }
  0x90   : > { %v468_v4 = vld [vmem:[%s360_s15] sm:$0xff]  ;;  %v462_v6 = vmul.f32 %v460_v3, %v454_v0  ;;  %v464_v7 = vmul.f32 %v460_v3, %v456_v1  ;;  %v466_v8 = vmul.f32 %v460_v3, %v458_v2  ;;  %v461_v13 = vld [vmem:[%s342_s16 + $0x8] sm:$0xff]  ;;  %v471_v19 = vld [vmem:[%s360_s15 + $0x18] sm:$0xff]  ;;  %s776_s28 = sshll.u32 %s1377_s21, 4 }
  0x91   : > { %v472_v9 = vld [vmem:[%s360_s15 + $0x20] sm:$0xff]  ;;  %v469_v14 = vld [vmem:[%s360_s15 + $0x8] sm:$0xff]  ;;  %v463_v18 = vmul.f32 %v461_v13, %v455_v10  ;;  %v465_v22 = vmul.f32 %v461_v13, %v457_v11  ;;  %v467_v23 = vmul.f32 %v461_v13, %v459_v12  ;;  %v492_v24 = vld [vmem:[%s1304_s14 + $0x10] sm:$0xff]  ;;  %s436_s9 = scalar_lea.vmem %s1351_s4, %s776_s28  ;;  %s445_s8 = scalar_lea.vmem %s1352_s5, %s776_s28 }
  0x92   : > { %v474_v15 = vsub.f32 %v462_v6, %v468_v4  ;;  %v476_v16 = vsub.f32 %v464_v7, %v470_v5  ;;  %v478_v17 = vsub.f32 %v466_v8, %v472_v9  ;;  %v473_v20 = vld [vmem:[%s360_s15 + $0x28] sm:$0xff]  ;;  %v490_v21 = vld [vmem:[%s1304_s14] sm:$0xff]  ;;  %v498_v34 = vsub.f32 %v456_v1, %v492_v24  ;;  %v493_v36 = vld [vmem:[%s1304_s14 + $0x18] sm:$0xff] }
  0x93   : > { %v494_v25 = vld [vmem:[%s1304_s14 + $0x20] sm:$0xff]  ;;  %v496_v26 = vsub.f32 %v454_v0, %v490_v21  ;;  %v491_v27 = vld [vmem:[%s1304_s14 + $0x8] sm:$0xff]  ;;  %v475_v31 = vsub.f32 %v463_v18, %v469_v14  ;;  %v477_v32 = vsub.f32 %v465_v22, %v471_v19  ;;  %v479_v33 = vsub.f32 %v467_v23, %v473_v20 }
  0x94   : > { %v480_v28 = vand.u32 2147483647, %v474_v15  ;;  %v482_v29 = vand.u32 2147483647, %v476_v16  ;;  %v484_v30 = vand.u32 2147483647, %v478_v17  ;;  %v500_v35 = vsub.f32 %v458_v2, %v494_v25 }
  0x95   : > { %v495_v37 = vld [vmem:[%s1304_s14 + $0x28] sm:$0xff]  ;;  %v481_v39 = vand.u32 2147483647, %v475_v31  ;;  %v502_v40 = vand.u32 2147483647, %v496_v26  ;;  %v497_v41 = vsub.f32 %v455_v10, %v491_v27  ;;  %v499_v45 = vsub.f32 %v457_v11, %v493_v36 }
  0x96   : > { %v486_v38 = vadd.f32 %v482_v29, %v480_v28  ;;  %v483_v42 = vand.u32 2147483647, %v477_v32  ;;  %v485_v43 = vand.u32 2147483647, %v479_v33  ;;  %v504_v44 = vand.u32 2147483647, %v498_v34 }
  0x97   : > { %v506_v47 = vand.u32 2147483647, %v500_v35  ;;  %v501_v48 = vsub.f32 %v459_v12, %v495_v37  ;;  %v503_v49 = vand.u32 2147483647, %v497_v41  ;;  %v505_v52 = vand.u32 2147483647, %v499_v45 }
  0x98   : > { %v487_v46 = vadd.f32 %v486_v38, %v484_v30  ;;  %v488_v50 = vadd.f32 %v483_v42, %v481_v39  ;;  %v508_v51 = vadd.f32 %v504_v44, %v502_v40 }
  0x99   : > { %v507_v53 = vand.u32 2147483647, %v501_v48  ;;  %v510_v56 = vadd.f32 %v505_v52, %v503_v49 }
  0x9a   : > { %v489_v54 = vadd.f32 %v488_v50, %v485_v43  ;;  %v509_v55 = vadd.f32 %v508_v51, %v506_v47  ;;  %516 = vst [vmem:[%s436_s9] sm:$0xff] %v487_v46 }
  0x9b   : > { %v511_v57 = vadd.f32 %v510_v56, %v507_v53 }
  0x9c   : > { %517 = vst [vmem:[%s436_s9 + $0x8] sm:$0xff] %v489_v54  ;;  %522 = vst [vmem:[%s445_s8] sm:$0xff] %v509_v55 }
  0x9d   : > { %523 = vst [vmem:[%s445_s8 + $0x8] sm:$0xff] %v511_v57 }
  0x9e PF: > { %s25_s23 = sadd.s32 1, %s1036_s23   ;;  %s1367_s12 = sld [smem:[#allocation13_spill]] }
  0x9f   : > { %p22_p12 = scmp.ge.s32.totalorder %s25_s23, 4   ;;  %s1368_s13 = sld [smem:[#allocation12_spill]] }
  0xa0   : > { %s1369_s18 = smov %s1020_s19  ;;  %s1370_s19 = smov %s1024_s20 }
  0xa1   : > { %s1372_s21 = smov %s1032_s22  ;;  %24 = sbr.rel (!%p22_p12) target bundleno = 10 (0xa), region = 129 }
  0xa4   : > { %s1371_s20 = smov %s1367_s12 }
  0xa5   : > { %s1373_s22 = smov %s1368_s13 }
  0xa8   :  { %577 = vsyncpa [#allocation3], 1 }
  0xa9   :  { %579 = vsyncpa [#allocation3 + $0x1], 1 }
  0xaa   :  { %580 = vsyncpa [#allocation5], 1 }
  0xab   :  { %582 = vsyncpa [#allocation5 + $0x1], 1 }
  0xac   :  { %583 = vsyncpa [#allocation8], 1 }
  0xad   :  { %585 = vsyncpa [#allocation8 + $0x1], 1 }

// kernel: retinex_loss.4
= control target key start
LH: loop header
LB: loop body
LE: loop exit
PB: predicated region body
PF: predicated region fallthrough
CT: control target
= control target key end

     0   :  { %s554_s9 = smov 0   ;;  %s700_s0 = inlined_call_operand.vmem [shape: f32[2,1,16,128], index: 0, kind: input, shape index: {}]   ;;  %s701_s1 = inlined_call_operand.vmem [shape: f32[2,1,16,128], index: 1, kind: input, shape index: {}]   ;;  %s702_s2 = inlined_call_operand.vmem [shape: f32[2,8,128], index: 2, kind: output, shape index: {}]  }
   0x1 LB: > { %s489_s10 = sadd.s32 4294967295, %s535_s9   ;;  %p493_p0 = scmp.ge.s32.totalorder %s535_s9, 1  ;;  %s535_s9 = sphi %s554_s9, %s12_s9  }
   0x2   : > { %p122_p1 = scmp.lt.s32.totalorder %s535_s9, 3 }
   0x4   : > { %p123_p2 = pnand %p493_p0, %p122_p1 }
   0x5   : > { %p148_p3 = scmp.lt.s32.totalorder (!%p123_p2), %s489_s10, 1  ;;  %v174_v0 = vlaneseq (!%p123_p2)  ;;  %s537_s15 = smov (!%p123_p2), 1  }
   0x6   : > { %126 = sbr.rel (%p123_p2) target bundleno = 379 (0x17b), region = 28  ;;  %s538_s16 = smov (!%p123_p2), 127  }
   0x7   : > { %v565_v1 = vshrl.u32 (!%p123_p2), %v174_v0, 7  ;;  %v624_v31 = vand.u32 (!%p123_p2), 127, %v174_v0 }
   0x9   : > { %v573_v4 = vadd.s32 (!%p123_p2), 8, %v565_v1  ;;  %vm192_vm0 = vcmp.lt.s32.totalorder (!%p123_p2), %v565_v1, 1  ;;  %vm206_vm1 = vcmp.lt.s32.totalorder (!%p123_p2), %v565_v1, 7  ;;  %vm196_vm3 = vcmp.ge.s32.totalorder (!%p123_p2), %v565_v1, 1 }
   0xa   : > { %vm183_vm4 = vcmp.ge.s32.totalorder (!%p123_p2), %v624_v31, 1  ;;  %vm176_vm5 = vcmp.lt.s32.totalorder (!%p123_p2), %v624_v31, 127  ;;  %vm319_vm6 = vcmp.eq.s32.totalorder (!%p123_p2), %v565_v1, 0  ;;  %vm332_vm7 = vcmp.eq.s32.totalorder (!%p123_p2), %v565_v1, 1 }
   0xb   : > { %vm210_vm2 = vcmp.lt.s32.totalorder (!%p123_p2), %v573_v4, 15  ;;  %vm345_vm8 = vcmp.eq.s32.totalorder (!%p123_p2), %v565_v1, 2  ;;  %vm358_vm9 = vcmp.eq.s32.totalorder (!%p123_p2), %v565_v1, 3  ;;  %vm371_vm10 = vcmp.eq.s32.totalorder (!%p123_p2), %v565_v1, 4 }
   0xc   : > { %vm384_vm11 = vcmp.eq.s32.totalorder (!%p123_p2), %v565_v1, 5  ;;  %vm397_vm12 = vcmp.eq.s32.totalorder (!%p123_p2), %v565_v1, 6  ;;  %vm410_vm13 = vcmp.eq.s32.totalorder (!%p123_p2), %v565_v1, 7 }
   0xd   : > { %s704_s10 = smov (!%p148_p3, %s489_s10), 1 }
   0xe   : > { %s501_s11 = sshll.u32 %s704_s10, 4  ;;  %s498_s27 = sshll.u32 %s704_s10, 3 }
   0xf   : > { %s152_s14 = scalar_lea.vmem %s700_s0, %s501_s11  ;;  %s157_s19 = scalar_lea.vmem %s701_s1, %s501_s11 }
  0x10   : > { %v162_v2 = vld [vmem:[%s152_s14] sm:$0xff]  ;;  %v163_v3 = vld [vmem:[%s152_s14 + $0x8] sm:$0xff]  ;;  %s161_s30 = scalar_lea.vmem %s702_s2, %s498_s27 }
  0x11   : > { %179 = vrot.lane.b32.xlu1 %v162_v2, %s537_s15  ;;  %170 = vrot.lane.b32.xlu0 %v162_v2, %s538_s16  ;;  %v215_v5 = vrot.slane %v162_v2, 1  ;;  %v221_v6 = vrot.slane %v162_v2, 7  ;;  %v216_v7 = vrot.slane %v163_v3, 1  ;;  %v222_v8 = vrot.slane %v163_v3, 7  ;;  %v167_v9 = vld [vmem:[%s157_s19 + $0x8] sm:$0xff]  ;;  %v166_v10 = vld [vmem:[%s157_s19] sm:$0xff] }
  0x12   : > { %v284_v17 = vrot.slane %v167_v9, 1  ;;  %v290_v18 = vrot.slane %v167_v9, 7  ;;  %v283_v19 = vrot.slane %v166_v10, 1  ;;  %v289_v20 = vrot.slane %v166_v10, 7 }
  0x13   : > { %v218_v11 = vsel %vm206_vm1, %v216_v7, %v215_v5  ;;  %v224_v12 = vsel %vm192_vm0, %v222_v8, %v221_v6  ;;  %v223_v14 = vsel %vm192_vm0, %v221_v6, %v222_v8  ;;  %v217_v15 = vsel %vm206_vm1, %v215_v5, %v216_v7 }
  0x14   : > { %v220_v13 = vsel %vm210_vm2, %v218_v11, 0.0  ;;  %v225_v16 = vsel %vm196_vm3, %v224_v12, 0.0  ;;  %v286_v23 = vsel %vm206_vm1, %v284_v17, %v283_v19  ;;  %v292_v24 = vsel %vm192_vm0, %v290_v18, %v289_v20 }
  0x15   : > { %181 = vrot.lane.b32.xlu1 %v163_v3, %s537_s15  ;;  %172 = vrot.lane.b32.xlu0 %v163_v3, %s538_s16  ;;  %v228_v21 = vsub.f32 %v220_v13, %v223_v14  ;;  %v227_v22 = vsub.f32 %v217_v15, %v225_v16  ;;  %v288_v25 = vsel %vm210_vm2, %v286_v23, 0.0  ;;  %v291_v26 = vsel %vm192_vm0, %v289_v20, %v290_v18 }
  0x16   : > { %v285_v27 = vsel %vm206_vm1, %v283_v19, %v284_v17  ;;  %v293_v28 = vsel %vm196_vm3, %v292_v24, 0.0  ;;  %v296_v29 = vsub.f32 %v288_v25, %v291_v26 }
  0x17   : > { %v616_v30 = vsub.f32 %v285_v27, %v293_v28  ;;  %v236_v60 = vmul.f32 2.0, %v228_v21  ;;  %v235_v6 = vmul.f32 2.0, %v227_v22 }
  0x18   : > { %v304_v18 = vmul.f32 2.0, %v296_v29 }
  0x19   : > { %253 = vrot.lane.b32.xlu1 %v167_v9, %s538_s16  ;;  %251 = vrot.lane.b32.xlu0 %v166_v10, %s538_s16 }
  0x1d   : > { %259 = vrot.lane.b32.xlu1 %v167_v9, %s537_s15  ;;  %257 = vrot.lane.b32.xlu0 %v166_v10, %s537_s15 }
  0x21   : > { %231 = vrot.lane.b32.xlu1 %v228_v21, %s537_s15  ;;  %229 = vrot.lane.b32.xlu0 %v227_v22, %s537_s15 }
  0x25   : > { %241 = vrot.lane.b32.xlu1 %v228_v21, %s538_s16  ;;  %239 = vrot.lane.b32.xlu0 %v227_v22, %s538_s16 }
  0x29   : > { %299 = vrot.lane.b32.xlu1 %v296_v29, %s537_s15  ;;  %297 = vrot.lane.b32.xlu0 %v616_v30, %s537_s15 }
  0x2d   : > { %309 = vrot.lane.b32.xlu1 %v296_v29, %s538_s16  ;;  %307 = vrot.lane.b32.xlu0 %v616_v30, %s538_s16 }
  0x83   : > { %v180_v32 = vpop.permute.xlu1 %179  ;;  %v171_v33 = vpop.permute.xlu0 %170 }
  0x84   : > { %v184_v34 = vsel %vm183_vm4, %v180_v32, 0.0  ;;  %v177_v35 = vsel %vm176_vm5, %v171_v33, 0.0 }
  0x85   : > { %v186_v36 = vsub.f32 %v177_v35, %v184_v34 }
  0x87   : > { %v182_v37 = vpop.permute.xlu1 %181  ;;  %v173_v38 = vpop.permute.xlu0 %172  ;;  %v188_v42 = vrot.slane %v186_v36, 7  ;;  %v204_v43 = vrot.slane %v186_v36, 1  ;;  %v200_v49 = vmul.f32 2.0, %v186_v36 }
  0x88   : > { %v185_v39 = vsel %vm183_vm4, %v182_v37, 0.0  ;;  %v178_v40 = vsel %vm176_vm5, %v173_v38, 0.0 }
  0x89   : > { %v187_v41 = vsub.f32 %v178_v40, %v185_v39 }
  0x8b   : > { %v189_v44 = vrot.slane %v187_v41, 7  ;;  %v201_v45 = vmul.f32 2.0, %v187_v41  ;;  %v205_v46 = vrot.slane %v187_v41, 1  ;;  %v254_v47 = vpop.permute.xlu1 %253  ;;  %v252_v48 = vpop.permute.xlu0 %251  ;;  %v303_v41 = vmul.f32 2.0, %v616_v30 }
  0x8c   : > { %v256_v56 = vsel %vm176_vm5, %v254_v47, 0.0  ;;  %v255_v57 = vsel %vm176_vm5, %v252_v48, 0.0 }
  0x8d   : > { %v193_v50 = vsel %vm192_vm0, %v188_v42, %v189_v44  ;;  %v194_v51 = vsel %vm192_vm0, %v189_v44, %v188_v42  ;;  %v208_v52 = vsel %vm206_vm1, %v205_v46, %v204_v43  ;;  %v207_v0 = vsel %vm206_vm1, %v204_v43, %v205_v46 }
  0x8e   : > { %v198_v53 = vsel %vm196_vm3, %v194_v51, 0.0  ;;  %v203_v54 = vadd.f32 %v201_v45, %v193_v50  ;;  %v212_v55 = vsel %vm210_vm2, %v208_v52, 0.0 }
  0x8f   : > { %v260_v58 = vpop.permute.xlu1 %259  ;;  %v258_v59 = vpop.permute.xlu0 %257  ;;  %v202_v61 = vadd.f32 %v200_v49, %v198_v53 }
  0x90   : > { %v262_v62 = vsel %vm183_vm4, %v260_v58, 0.0  ;;  %v261_v63 = vsel %vm183_vm4, %v258_v59, 0.0  ;;  %v214_v2 = vadd.f32 %v212_v55, %v203_v54 }
  0x91   : > { %v264_v3 = vsub.f32 %v256_v56, %v262_v62  ;;  %v263_v5 = vsub.f32 %v255_v57, %v261_v63  ;;  %v213_v7 = vadd.f32 %v207_v0, %v202_v61 }
  0x92   : > { %v248_v8 = vand.u32 2147483647, %v214_v2 }
  0x93   : > { %v266_v9 = vrot.slane %v264_v3, 7  ;;  %v272_v10 = vmul.f32 2.0, %v264_v3  ;;  %v276_v11 = vrot.slane %v264_v3, 1  ;;  %v265_v12 = vrot.slane %v263_v5, 7  ;;  %v232_v13 = vpop.permute.xlu1 %231  ;;  %v230_v14 = vpop.permute.xlu0 %229 }
  0x94   : > { %v275_v15 = vrot.slane %v263_v5, 1  ;;  %v234_v16 = vsel %vm183_vm4, %v232_v13, 0.0  ;;  %v233_v17 = vsel %vm183_vm4, %v230_v14, 0.0  ;;  %v247_v21 = vand.u32 2147483647, %v213_v7 }
  0x95   : > { %v238_v19 = vadd.f32 %v236_v60, %v234_v16  ;;  %v237_v20 = vadd.f32 %v235_v6, %v233_v17  ;;  %v267_v22 = vsel %vm192_vm0, %v265_v12, %v266_v9  ;;  %v271_v23 = vmul.f32 2.0, %v263_v5 }
  0x96   : > { %v268_v24 = vsel %vm192_vm0, %v266_v9, %v265_v12  ;;  %v274_v25 = vadd.f32 %v272_v10, %v267_v22  ;;  %v278_v26 = vsel %vm206_vm1, %v276_v11, %v275_v15  ;;  %v333_v27 = vmax.f32 %v247_v21, %v248_v8 }
  0x97   : > { %v242_v28 = vpop.permute.xlu1 %241  ;;  %v320_v32 = vmin.f32 %v247_v21, %v248_v8  ;;  %v240_v33 = vpop.permute.xlu0 %239  ;;  %v269_v29 = vsel %vm196_vm3, %v268_v24, 0.0  ;;  %v280_v34 = vsel %vm210_vm2, %v278_v26, 0.0  ;;  %v277_v42 = vsel %vm206_vm1, %v275_v15, %v276_v11 }
  0x98   : > { %v244_v35 = vsel %vm176_vm5, %v242_v28, 0.0  ;;  %v243_v36 = vsel %vm176_vm5, %v240_v33, 0.0  ;;  %v273_v37 = vadd.f32 %v271_v23, %v269_v29  ;;  %v282_v38 = vadd.f32 %v280_v34, %v274_v25  ;;  %334 = vmax.xlane.f32.xlu1 %v333_v27 }
  0x99   : > { %v246_v39 = vadd.f32 %v244_v35, %v238_v19  ;;  %321 = vmin.xlane.f32.xlu0 %v320_v32  ;;  %v245_v40 = vadd.f32 %v243_v36, %v237_v20 }
  0x9a   : > { %v281_v43 = vadd.f32 %v277_v42, %v273_v37  ;;  %v316_v4 = vand.u32 2147483647, %v282_v38 }
  0x9b   : > { %v250_v44 = vand.u32 2147483647, %v246_v39  ;;  %v249_v45 = vand.u32 2147483647, %v245_v40  ;;  %v300_v46 = vpop.permute.xlu1 %299  ;;  %v298_v47 = vpop.permute.xlu0 %297 }
  0x9c   : > { %v302_v48 = vsel %vm183_vm4, %v300_v46, 0.0  ;;  %v301_v49 = vsel %vm183_vm4, %v298_v47, 0.0  ;;  %v315_v50 = vand.u32 2147483647, %v281_v43 }
  0x9d   : > { %v306_v51 = vadd.f32 %v304_v18, %v302_v48  ;;  %v305_v52 = vadd.f32 %v303_v41, %v301_v49  ;;  %v372_v53 = vmin.f32 %v249_v45, %v250_v44  ;;  %v385_v30 = vmax.f32 %v249_v45, %v250_v44 }
  0x9e   : > { %v346_v54 = vmin.f32 %v315_v50, %v316_v4  ;;  %v359_v61 = vmax.f32 %v315_v50, %v316_v4 }
  0x9f   : > { %v310_v55 = vpop.permute.xlu1 %309  ;;  %v308_v56 = vpop.permute.xlu0 %307  ;;  %373 = vmin.xlane.f32.xlu1 %v372_v53 }
  0xa0   : > { %v312_v57 = vsel %vm176_vm5, %v310_v55, 0.0  ;;  %347 = vmin.xlane.f32.xlu0 %v346_v54  ;;  %v311_v58 = vsel %vm176_vm5, %v308_v56, 0.0 }
  0xa1   : > { %v314_v59 = vadd.f32 %v312_v57, %v306_v51  ;;  %v313_v60 = vadd.f32 %v311_v58, %v305_v52 }
  0xa3   : > { %v318_v62 = vand.u32 2147483647, %v314_v59  ;;  %v317_v63 = vand.u32 2147483647, %v313_v60 }
  0xa4   : > { %360 = vmax.xlane.f32.xlu0 %v359_v61 }
  0xa5   : > { %v398_v0 = vmin.f32 %v317_v63, %v318_v62  ;;  %v411_v2 = vmax.f32 %v317_v63, %v318_v62 }
  0xa7   : > { %399 = vmin.xlane.f32.xlu1 %v398_v0 }
  0xa8   : > { %386 = vmax.xlane.f32.xlu0 %v385_v30 }
  0xac   : > { %412 = vmax.xlane.f32.xlu0 %v411_v2 }
 0x125   : > { %v335_v3 = vpop.xlane.xlu1 %334 }
 0x126   : > { %v322_v5 = vpop.xlane.xlu0 %321  ;;  %v336_v6 = vrot.slane %v335_v3, 4 }
 0x127   : > { %v323_v7 = vrot.slane %v322_v5, 4 }
 0x128   : > { %v337_v8 = vmax.f32 %v335_v3, %v336_v6 }
 0x129   : > { %v324_v9 = vmin.f32 %v322_v5, %v323_v7 }
 0x12a   : > { %v338_v10 = vrot.slane %v337_v8, 2 }
 0x12b   : > { %v325_v31 = vrot.slane %v324_v9, 2 }
 0x12c   : > { %v374_v11 = vpop.xlane.xlu1 %373  ;;  %v339_v15 = vmax.f32 %v337_v8, %v338_v10 }
 0x12d   : > { %v348_v12 = vpop.xlane.xlu0 %347  ;;  %v375_v13 = vrot.slane %v374_v11, 4  ;;  %v326_v14 = vmin.f32 %v324_v9, %v325_v31 }
 0x12e   : > { %v349_v16 = vrot.slane %v348_v12, 4  ;;  %v340_v19 = vrot.slane %v339_v15, 1 }
 0x12f   : > { %v376_v17 = vmin.f32 %v374_v11, %v375_v13  ;;  %v327_v18 = vrot.slane %v326_v14, 1 }
 0x130   : > { %v350_v20 = vmin.f32 %v348_v12, %v349_v16  ;;  %v341_v24 = vmax.f32 %v339_v15, %v340_v19 }
 0x131   : > { %v377_v21 = vrot.slane %v376_v17, 2  ;;  %v361_v22 = vpop.xlane.xlu0 %360  ;;  %v328_v23 = vmin.f32 %v326_v14, %v327_v18 }
 0x132   : > { %v351_v25 = vrot.slane %v350_v20, 2  ;;  %v362_v26 = vrot.slane %v361_v22, 4 }
 0x133   : > { %503 = vpush %v328_v23  ;;  %v378_v34 = vmin.f32 %v376_v17, %v377_v21 }
 0x134   : > { %v363_v27 = vmax.f32 %v361_v22, %v362_v26  ;;  %505 = vpush %v341_v24  ;;  %v400_v28 = vpop.xlane.xlu1 %399  ;;  %v352_v32 = vmin.f32 %v350_v20, %v351_v25 }
 0x135   : > { %v387_v33 = vpop.xlane.xlu0 %386  ;;  %v401_v29 = vrot.slane %v400_v28, 4  ;;  %v379_v4 = vrot.slane %v378_v34, 1 }
 0x136   : > { %v364_v35 = vrot.slane %v363_v27, 2  ;;  %v388_v36 = vrot.slane %v387_v33, 4  ;;  %v353_v37 = vrot.slane %v352_v32, 1 }
 0x137   : > { %v402_v38 = vmin.f32 %v400_v28, %v401_v29  ;;  %v380_v51 = vmin.f32 %v378_v34, %v379_v4 }
 0x138   : > { %v389_v39 = vmax.f32 %v387_v33, %v388_v36  ;;  %v354_v40 = vmin.f32 %v352_v32, %v353_v37  ;;  %v365_v41 = vmax.f32 %v363_v27, %v364_v35 }
 0x139   : > { %v403_v42 = vrot.slane %v402_v38, 2  ;;  %v413_v43 = vpop.xlane.xlu0 %412 }
 0x13a   : > { %v390_v44 = vrot.slane %v389_v39, 2  ;;  %v414_v45 = vrot.slane %v413_v43, 4  ;;  %507 = vpush %v354_v40  ;;  %v366_v46 = vrot.slane %v365_v41, 1 }
 0x13b   : > { %v404_v47 = vmin.f32 %v402_v38, %v403_v42 }
 0x13c   : > { %v415_v48 = vmax.f32 %v413_v43, %v414_v45  ;;  %v367_v49 = vmax.f32 %v365_v41, %v366_v46  ;;  %v391_v50 = vmax.f32 %v389_v39, %v390_v44 }
 0x13d   : > { %v405_v52 = vrot.slane %v404_v47, 1 }
 0x13e   : > { %v416_v53 = vrot.slane %v415_v48, 2  ;;  %509 = vpush %v367_v49  ;;  %v392_v30 = vrot.slane %v391_v50, 1 }
 0x13f   : > { %511 = vpush %v380_v51  ;;  %v406_v54 = vmin.f32 %v404_v47, %v405_v52 }
 0x140   : > { %v417_v55 = vmax.f32 %v415_v48, %v416_v53  ;;  %v393_v56 = vmax.f32 %v391_v50, %v392_v30 }
 0x142   : > { %513 = vpush %v393_v56  ;;  %v418_v57 = vrot.slane %v417_v55, 1 }
 0x143   : > { %515 = vpush %v406_v54 }
 0x144   : > { %v419_v58 = vmax.f32 %v417_v55, %v418_v57 }
 0x146   : > { %517 = vpush %v419_v58 }
 0x164   : > { %s504_s20 = spop %503 }
 0x165   : > { %v330_v59 = vstv %s504_s20  ;;  %s506_s21 = spop %505 }
 0x166   : > { %v331_v60 = vsel %vm319_vm6, %v330_v59, 0.0  ;;  %v343_v61 = vstv %s506_s21 }
 0x167   : > { %v344_v63 = vsel %vm332_vm7, %v343_v61, %v331_v60 }
 0x16b   : > { %s508_s22 = spop %507 }
 0x16c   : > { %v356_v62 = vstv %s508_s22 }
 0x16d   : > { %v357_v0 = vsel %vm345_vm8, %v356_v62, %v344_v63 }
 0x16f   : > { %s510_s23 = spop %509 }
 0x170   : > { %v369_v2 = vstv %s510_s23  ;;  %s512_s24 = spop %511 }
 0x171   : > { %v370_v3 = vsel %vm358_vm9, %v369_v2, %v357_v0  ;;  %v382_v5 = vstv %s512_s24 }
 0x172   : > { %v383_v6 = vsel %vm371_vm10, %v382_v5, %v370_v3 }
 0x173   : > { %s514_s25 = spop %513 }
 0x174   : > { %v395_v7 = vstv %s514_s25  ;;  %s516_s26 = spop %515 }
 0x175   : > { %v396_v8 = vsel %vm384_vm11, %v395_v7, %v383_v6  ;;  %v408_v9 = vstv %s516_s26 }
 0x176   : > { %v409_v10 = vsel %vm397_vm12, %v408_v9, %v396_v8 }
 0x177   : > { %s518_s3 = spop %517 }
 0x178   : > { %v421_v31 = vstv %s518_s3 }
 0x179   : > { %v422_v11 = vsel %vm410_vm13, %v421_v31, %v409_v10 }
 0x17a   : > { %423 = vst [vmem:[%s161_s30] sm:$0xff] %v422_v11 }
 0x17b PF: > { %s12_s9 = sadd.s32 1, %s535_s9  }
 0x17c   : > { %p9_p4 = scmp.ge.s32.totalorder %s12_s9, 4  }
 0x17e   :  { %11 = sbr.rel (!%p9_p4) target bundleno = 1 (0x1), region = 61 }

// kernel: retinex_loss.5
= control target key start
LH: loop header
LB: loop body
LE: loop exit
PB: predicated region body
PF: predicated region fallthrough
CT: control target
= control target key end

     0   :  { %s748_s0 = inlined_call_operand.vmem [shape: f32[8], index: 0, kind: input, shape index: {}]   ;;  %s749_s1 = inlined_call_operand.vmem [shape: f32[2,1,16,128], index: 1, kind: input, shape index: {}]   ;;  %s750_s2 = inlined_call_operand.vmem [shape: f32[2,1,16,128], index: 2, kind: input, shape index: {}]   ;;  %s751_s3 = inlined_call_operand.vmem [shape: f32[2,8,128], index: 3, kind: output, shape index: {}]  }
   0x1   :  { %s8_s14 = sshll.u32 %s748_s0, 4  ;;  %s9_s14 = int_to_ptr.vmem [resolvable:$true] %s8_s14 }
   0x2   :  { %s530_s15 = scalar_lea.vmem %s9_s14, 16  ;;  %p535_p1 = scmp.lt.s32.totalorder %s9_s14, %s9_s14 }
   0x3   :  { %p531_p0 = scmp.ne.s32.totalorder %s9_s14, %s530_s15  ;;  %p536_p2 = scmp.lt.s32.totalorder %s530_s15, %s530_s15 }
   0x5   :  { %p537_p3 = por %p536_p2, %p535_p1 }
   0x7   :  { %p538_p4 = pnand %p537_p3, %p531_p0 }
   0x9   :  { %541 = shalt.err (!%p538_p4)  }
   0xa   :  { %s552_s16 = smov [#allocation3]  }
   0xb   :  { %11 = dma.vmem_to_smem %s9_s14, 16, %s552_s16, [#allocation2] }
   0xc   :  { %546 = dma.done.wait [#allocation2], 16 }
   0xd   :  { %547 = vsyncadd [#allocation2], 4294967280 }
   0xe   :  { %13 = sfence }
   0xf   :  { %s578_s17 = smov 0  }
  0x10 LB: > { %s478_s0 = sadd.s32 4294967295, %s550_s17   ;;  %p482_p5 = scmp.ge.s32.totalorder %s550_s17, 1  ;;  %s550_s17 = sphi %s578_s17, %s19_s17  }
  0x11   : > { %p129_p6 = scmp.lt.s32.totalorder %s550_s17, 3 }
  0x13   : > { %p130_p7 = pnand %p482_p5, %p129_p6 }
  0x14   : > { %p155_p8 = scmp.lt.s32.totalorder (!%p130_p7), %s478_s0, 1  ;;  %v181_v0 = vlaneseq (!%p130_p7)  ;;  %s553_s22 = smov (!%p130_p7), 1  }
  0x15   : > { %133 = sbr.rel (%p130_p7) target bundleno = 414 (0x19e), region = 28  ;;  %s554_s23 = smov (!%p130_p7), 127  }
  0x16   : > { %v589_v1 = vshrl.u32 (!%p130_p7), %v181_v0, 7  ;;  %s648_s27 = sld [smem:[#allocation3]] (!%p130_p7)  ;;  %s488_s28 = sld [smem:[#allocation3 + $0x4]] (!%p130_p7)  ;;  %v650_v31 = vand.u32 (!%p130_p7), 127, %v181_v0 }
  0x17   : > { %s652_s29 = sld [smem:[#allocation3 + $0x1]] (!%p130_p7)  ;;  %s490_s30 = sld [smem:[#allocation3 + $0x5]] (!%p130_p7) }
  0x18   : > { %v600_v4 = vadd.s32 (!%p130_p7), 8, %v589_v1  ;;  %vm199_vm0 = vcmp.lt.s32.totalorder (!%p130_p7), %v589_v1, 1  ;;  %vm213_vm1 = vcmp.lt.s32.totalorder (!%p130_p7), %v589_v1, 7  ;;  %vm203_vm3 = vcmp.ge.s32.totalorder (!%p130_p7), %v589_v1, 1  ;;  %s654_s4 = sld [smem:[#allocation3 + $0x2]] (!%p130_p7)  ;;  %s492_s5 = sld [smem:[#allocation3 + $0x6]] (!%p130_p7) }
  0x19   : > { %vm190_vm4 = vcmp.ge.s32.totalorder (!%p130_p7), %v650_v31, 1  ;;  %vm183_vm5 = vcmp.lt.s32.totalorder (!%p130_p7), %v650_v31, 127  ;;  %s663_s7 = sld [smem:[#allocation3 + $0x3]] (!%p130_p7)  ;;  %s667_s10 = sld [smem:[#allocation3 + $0x7]] (!%p130_p7) }
  0x1a   : > { %vm217_vm2 = vcmp.lt.s32.totalorder (!%p130_p7), %v600_v4, 15 }
  0x1c   : > { %s753_s0 = smov (!%p155_p8, %s478_s0), 1  ;;  %s331_s6 = ssub.f32 %s488_s28, %s648_s27  ;;  %v328_v51 = vstv %s648_s27 }
  0x1d   : > { %s497_s18 = sshll.u32 %s753_s0, 4  ;;  %s342_s8 = ssub.f32 %s490_s30, %s652_s29 }
  0x1e   : > { %s159_s21 = scalar_lea.vmem %s749_s1, %s497_s18  ;;  %s164_s26 = scalar_lea.vmem %s750_s2, %s497_s18 }
  0x1f   : > { %v169_v2 = vld [vmem:[%s159_s21] sm:$0xff]  ;;  %v170_v3 = vld [vmem:[%s159_s21 + $0x8] sm:$0xff]  ;;  %s373_s9 = ssub.f32 %s492_s5, %s654_s4  ;;  %s487_s16 = sshll.u32 %s753_s0, 3 }
  0x20   : > { %186 = vrot.lane.b32.xlu1 %v169_v2, %s553_s22  ;;  %177 = vrot.lane.b32.xlu0 %v169_v2, %s554_s23  ;;  %v222_v5 = vrot.slane %v169_v2, 1  ;;  %v228_v6 = vrot.slane %v169_v2, 7  ;;  %v223_v7 = vrot.slane %v170_v3, 1  ;;  %v229_v8 = vrot.slane %v170_v3, 7  ;;  %v174_v9 = vld [vmem:[%s164_s26 + $0x8] sm:$0xff]  ;;  %v173_v12 = vld [vmem:[%s164_s26] sm:$0xff]  ;;  %s384_s14 = ssub.f32 %s667_s10, %s663_s7 }
  0x21   : > { %v291_v10 = vrot.slane %v174_v9, 1  ;;  %v297_v11 = vrot.slane %v174_v9, 7  ;;  %v290_v13 = vrot.slane %v173_v12, 1  ;;  %v296_v14 = vrot.slane %v173_v12, 7  ;;  %s673_s11 = sadd.f32 0.0001, %s331_s6 }
  0x22   : > { %v225_v15 = vsel %vm213_vm1, %v223_v7, %v222_v5  ;;  %v231_v16 = vsel %vm199_vm0, %v229_v8, %v228_v6  ;;  %v230_v18 = vsel %vm199_vm0, %v228_v6, %v229_v8  ;;  %v224_v19 = vsel %vm213_vm1, %v222_v5, %v223_v7  ;;  %s675_s12 = sadd.f32 0.0001, %s342_s8 }
  0x23   : > { %v227_v17 = vsel %vm217_vm2, %v225_v15, 0.0  ;;  %v232_v20 = vsel %vm203_vm3, %v231_v16, 0.0  ;;  %v293_v21 = vsel %vm213_vm1, %v291_v10, %v290_v13  ;;  %v299_v22 = vsel %vm199_vm0, %v297_v11, %v296_v14  ;;  %s677_s13 = sadd.f32 0.0001, %s373_s9 }
  0x24   : > { %188 = vrot.lane.b32.xlu1 %v170_v3, %s553_s22  ;;  %179 = vrot.lane.b32.xlu0 %v170_v3, %s554_s23  ;;  %v235_v23 = vsub.f32 %v227_v17, %v230_v18  ;;  %v234_v24 = vsub.f32 %v224_v19, %v232_v20  ;;  %v295_v25 = vsel %vm217_vm2, %v293_v21, 0.0  ;;  %v298_v26 = vsel %vm199_vm0, %v296_v14, %v297_v11  ;;  %s385_s15 = sadd.f32 0.0001, %s384_s14 }
  0x25   : > { %v292_v27 = vsel %vm213_vm1, %v290_v13, %v291_v10  ;;  %v300_v28 = vsel %vm203_vm3, %v299_v22, 0.0  ;;  %v303_v29 = vsub.f32 %v295_v25, %v298_v26  ;;  %v333_v52 = vstv %s673_s11 }
  0x26   : > { %v638_v30 = vsub.f32 %v292_v27, %v300_v28  ;;  %v243_v49 = vmul.f32 2.0, %v235_v23  ;;  %v242_v50 = vmul.f32 2.0, %v234_v24  ;;  %v344_v60 = vstv %s675_s12 }
  0x27   : > { %v311_v59 = vmul.f32 2.0, %v303_v29  ;;  %v375_v2 = vstv %s677_s13  ;;  %514 = vrcp.f32 %v333_v52 }
  0x28   : > { %260 = vrot.lane.b32.xlu1 %v174_v9, %s554_s23  ;;  %258 = vrot.lane.b32.xlu0 %v173_v12, %s554_s23  ;;  %516 = vrcp.f32 %v344_v60  ;;  %v310_v13 = vmul.f32 2.0, %v638_v30 }
  0x29   : > { %518 = vrcp.f32 %v375_v2 }
  0x2c   : > { %266 = vrot.lane.b32.xlu1 %v174_v9, %s553_s22  ;;  %264 = vrot.lane.b32.xlu0 %v173_v12, %s553_s22 }
  0x30   : > { %238 = vrot.lane.b32.xlu1 %v235_v23, %s553_s22  ;;  %236 = vrot.lane.b32.xlu0 %v234_v24, %s553_s22 }
  0x34   : > { %306 = vrot.lane.b32.xlu1 %v303_v29, %s553_s22  ;;  %304 = vrot.lane.b32.xlu0 %v638_v30, %s553_s22  ;;  %s168_s22 = scalar_lea.vmem %s751_s3, %s487_s16 }
  0x38   : > { %248 = vrot.lane.b32.xlu1 %v235_v23, %s554_s23  ;;  %246 = vrot.lane.b32.xlu0 %v234_v24, %s554_s23 }
  0x3c   : > { %316 = vrot.lane.b32.xlu1 %v303_v29, %s554_s23  ;;  %314 = vrot.lane.b32.xlu0 %v638_v30, %s554_s23 }
  0x92   : > { %v187_v32 = vpop.permute.xlu1 %186  ;;  %v178_v33 = vpop.permute.xlu0 %177 }
  0x93   : > { %v191_v34 = vsel %vm190_vm4, %v187_v32, 0.0  ;;  %v184_v35 = vsel %vm183_vm5, %v178_v33, 0.0 }
  0x94   : > { %v193_v36 = vsub.f32 %v184_v35, %v191_v34 }
  0x96   : > { %v189_v37 = vpop.permute.xlu1 %188  ;;  %v180_v38 = vpop.permute.xlu0 %179  ;;  %v195_v42 = vrot.slane %v193_v36, 7  ;;  %v211_v43 = vrot.slane %v193_v36, 1  ;;  %v207_v53 = vmul.f32 2.0, %v193_v36 }
  0x97   : > { %v192_v39 = vsel %vm190_vm4, %v189_v37, 0.0  ;;  %v185_v40 = vsel %vm183_vm5, %v180_v38, 0.0  ;;  %v386_v38 = vstv %s385_s15 }
  0x98   : > { %v194_v41 = vsub.f32 %v185_v40, %v192_v39  ;;  %520 = vrcp.f32 %v386_v38 }
  0x9a   : > { %v196_v44 = vrot.slane %v194_v41, 7  ;;  %v208_v45 = vmul.f32 2.0, %v194_v41  ;;  %v212_v46 = vrot.slane %v194_v41, 1  ;;  %v261_v47 = vpop.permute.xlu1 %260  ;;  %v259_v48 = vpop.permute.xlu0 %258 }
  0x9b   : > { %v263_v3 = vsel %vm183_vm5, %v261_v47, 0.0  ;;  %v262_v5 = vsel %vm183_vm5, %v259_v48, 0.0 }
  0x9c   : > { %v200_v54 = vsel %vm199_vm0, %v195_v42, %v196_v44  ;;  %v201_v55 = vsel %vm199_vm0, %v196_v44, %v195_v42  ;;  %v215_v56 = vsel %vm213_vm1, %v212_v46, %v211_v43  ;;  %v214_v8 = vsel %vm213_vm1, %v211_v43, %v212_v46  ;;  %v515_v43 = vpop.eup %514 }
  0x9d   : > { %v205_v57 = vsel %vm203_vm3, %v201_v55, 0.0  ;;  %v210_v58 = vadd.f32 %v208_v45, %v200_v54  ;;  %v219_v62 = vsel %vm217_vm2, %v215_v56, 0.0  ;;  %v339_v46 = vstv %s652_s29  ;;  %v517_v48 = vpop.eup %516 }
  0x9e   : > { %v209_v61 = vadd.f32 %v207_v53, %v205_v57  ;;  %v267_v63 = vpop.permute.xlu1 %266  ;;  %v265_v0 = vpop.permute.xlu0 %264 }
  0x9f   : > { %v269_v6 = vsel %vm190_vm4, %v267_v63, 0.0  ;;  %v268_v7 = vsel %vm190_vm4, %v265_v0, 0.0  ;;  %v221_v12 = vadd.f32 %v219_v62, %v210_v58  ;;  %v519_v53 = vpop.eup %518  ;;  %v370_v63 = vstv %s654_s4 }
  0xa0   : > { %v271_v9 = vsub.f32 %v263_v3, %v269_v6  ;;  %v270_v10 = vsub.f32 %v262_v5, %v268_v7  ;;  %v220_v11 = vadd.f32 %v214_v8, %v209_v61 }
  0xa1   : > { %v255_v28 = vand.u32 2147483647, %v221_v12  ;;  %v381_v12 = vstv %s663_s7 }
  0xa2   : > { %v273_v14 = vrot.slane %v271_v9, 7  ;;  %v279_v15 = vmul.f32 2.0, %v271_v9  ;;  %v283_v16 = vrot.slane %v271_v9, 1  ;;  %v272_v17 = vrot.slane %v270_v10, 7  ;;  %v239_v18 = vpop.permute.xlu1 %238  ;;  %v237_v19 = vpop.permute.xlu0 %236 }
  0xa3   : > { %v278_v20 = vmul.f32 2.0, %v270_v10  ;;  %v282_v21 = vrot.slane %v270_v10, 1  ;;  %v241_v22 = vsel %vm190_vm4, %v239_v18, 0.0  ;;  %v240_v23 = vsel %vm190_vm4, %v237_v19, 0.0  ;;  %v521_v19 = vpop.eup %520 }
  0xa4   : > { %v274_v24 = vsel %vm199_vm0, %v272_v17, %v273_v14  ;;  %v275_v25 = vsel %vm199_vm0, %v273_v14, %v272_v17  ;;  %v245_v26 = vadd.f32 %v243_v49, %v241_v22  ;;  %v244_v27 = vadd.f32 %v242_v50, %v240_v23 }
  0xa5   : > { %v276_v29 = vsel %vm203_vm3, %v275_v25, 0.0  ;;  %v281_v30 = vadd.f32 %v279_v15, %v274_v24  ;;  %v285_v32 = vsel %vm213_vm1, %v283_v16, %v282_v21  ;;  %v284_v34 = vsel %vm213_vm1, %v282_v21, %v283_v16 }
  0xa6   : > { %v280_v33 = vadd.f32 %v278_v20, %v276_v29  ;;  %v287_v35 = vsel %vm217_vm2, %v285_v32, 0.0  ;;  %v307_v36 = vpop.permute.xlu1 %306  ;;  %v305_v37 = vpop.permute.xlu0 %304  ;;  %v254_v41 = vand.u32 2147483647, %v220_v11  ;;  %v330_v47 = vsub.f32 %v255_v28, %v328_v51 }
  0xa7   : > { %v309_v39 = vsel %vm190_vm4, %v307_v36, 0.0  ;;  %v308_v40 = vsel %vm190_vm4, %v305_v37, 0.0  ;;  %v289_v42 = vadd.f32 %v287_v35, %v281_v30 }
  0xa8   : > { %v288_v44 = vadd.f32 %v284_v34, %v280_v33  ;;  %v313_v1 = vadd.f32 %v311_v59, %v309_v39  ;;  %v312_v45 = vadd.f32 %v310_v13, %v308_v40  ;;  %v329_v56 = vsub.f32 %v254_v41, %v328_v51 }
  0xa9   : > { %v323_v4 = vand.u32 2147483647, %v289_v42  ;;  %v336_v61 = vmul.f32 %v515_v43, %v330_v47 }
  0xaa   : > { %v322_v49 = vand.u32 2147483647, %v288_v44  ;;  %v249_v50 = vpop.permute.xlu1 %248  ;;  %v247_v52 = vpop.permute.xlu0 %246  ;;  %v335_v51 = vmul.f32 %v515_v43, %v329_v56 }
  0xab   : > { %v251_v54 = vsel %vm183_vm5, %v249_v50, 0.0  ;;  %v250_v55 = vsel %vm183_vm5, %v247_v52, 0.0  ;;  %v341_v57 = vsub.f32 %v323_v4, %v339_v46 }
  0xac   : > { %v253_v58 = vadd.f32 %v251_v54, %v245_v26  ;;  %v252_v59 = vadd.f32 %v250_v55, %v244_v27  ;;  %v340_v60 = vsub.f32 %v322_v49, %v339_v46 }
  0xad   : > { %v347_v62 = vmul.f32 %v517_v48, %v341_v57 }
  0xae   : > { %v257_v0 = vand.u32 2147483647, %v253_v58  ;;  %v256_v2 = vand.u32 2147483647, %v252_v59  ;;  %v317_v3 = vpop.permute.xlu1 %316  ;;  %v315_v5 = vpop.permute.xlu0 %314  ;;  %v346_v6 = vmul.f32 %v517_v48, %v340_v60 }
  0xaf   : > { %v319_v7 = vsel %vm183_vm5, %v317_v3, 0.0  ;;  %v318_v8 = vsel %vm183_vm5, %v315_v5, 0.0  ;;  %v349_v9 = vadd.f32 %v347_v62, %v336_v61 }
  0xb0   : > { %v321_v10 = vadd.f32 %v319_v7, %v313_v1  ;;  %v320_v11 = vadd.f32 %v318_v8, %v312_v45  ;;  %v348_v13 = vadd.f32 %v346_v6, %v335_v51  ;;  %v372_v15 = vsub.f32 %v257_v0, %v370_v63 }
  0xb1   : > { %v351_v14 = vmul.f32 -10.0, %v349_v9  ;;  %v371_v16 = vsub.f32 %v256_v2, %v370_v63 }
  0xb2   : > { %v325_v17 = vand.u32 2147483647, %v321_v10  ;;  %v324_v18 = vand.u32 2147483647, %v320_v11  ;;  %v350_v20 = vmul.f32 -10.0, %v348_v13  ;;  %v378_v31 = vmul.f32 %v519_v53, %v372_v15 }
  0xb3   : > { %v354_v21 = vmul.f32 1.442695, %v351_v14  ;;  %v377_v25 = vmul.f32 %v519_v53, %v371_v16 }
  0xb4   : > { %v383_v22 = vsub.f32 %v325_v17, %v381_v12  ;;  %v382_v23 = vsub.f32 %v324_v18, %v381_v12  ;;  %v352_v24 = vmul.f32 1.442695, %v350_v20 }
  0xb5   : > { %522 = vpow2.f32 %v354_v21 }
  0xb6   : > { %v389_v26 = vmul.f32 %v521_v19, %v383_v22  ;;  %v388_v27 = vmul.f32 %v521_v19, %v382_v23  ;;  %524 = vpow2.f32 %v352_v24 }
  0xb8   : > { %v390_v28 = vadd.f32 %v388_v27, %v377_v25  ;;  %v391_v29 = vadd.f32 %v389_v26, %v378_v31 }
  0xba   : > { %v392_v30 = vmul.f32 -10.0, %v390_v28  ;;  %v393_v32 = vmul.f32 -10.0, %v391_v29 }
  0xbc   : > { %v394_v33 = vmul.f32 1.442695, %v392_v30  ;;  %v396_v34 = vmul.f32 1.442695, %v393_v32 }
  0xbe   : > { %526 = vpow2.f32 %v394_v33 }
  0xbf   : > { %v523_v35 = vpop.eup %522  ;;  %528 = vpow2.f32 %v396_v34 }
  0xc0   : > { %v357_v36 = vmul.f32 %v523_v35, %v349_v9  ;;  %v525_v37 = vpop.eup %524 }
  0xc1   : > { %v356_v38 = vmul.f32 %v525_v37, %v348_v13 }
  0xc3   : > { %v358_v39 = vadd.f32 %v357_v36, %v356_v38 }
  0xc5   : > { %359 = vadd.xlane.f32.xlu0 %v358_v39 }
  0xc8   : > { %v527_v40 = vpop.eup %526 }
  0xc9   : > { %v529_v41 = vpop.eup %528  ;;  %v398_v42 = vmul.f32 %v527_v40, %v390_v28 }
  0xca   : > { %v399_v43 = vmul.f32 %v529_v41, %v391_v29 }
  0xcc   : > { %v400_v44 = vadd.f32 %v399_v43, %v398_v42 }
  0xce   : > { %401 = vadd.xlane.f32.xlu1 %v400_v44 }
 0x152   : > { %v360_v1 = vpop.xlane.xlu0 %359 }
 0x153   : > { %v361_v45 = vrot.slane %v360_v1, 4 }
 0x155   : > { %v362_v46 = vadd.f32 %v361_v45, %v360_v1 }
 0x157   : > { %v363_v4 = vrot.slane %v362_v46, 2 }
 0x159   : > { %v364_v47 = vadd.f32 %v363_v4, %v362_v46 }
 0x15b   : > { %v402_v48 = vpop.xlane.xlu1 %401  ;;  %v365_v50 = vrot.slane %v364_v47, 1 }
 0x15c   : > { %v403_v49 = vrot.slane %v402_v48, 4 }
 0x15d   : > { %v366_v53 = vadd.f32 %v365_v50, %v364_v47 }
 0x15e   : > { %v404_v52 = vadd.f32 %v403_v49, %v402_v48 }
 0x15f   : > { %499 = vpush %v366_v53 }
 0x160   : > { %v405_v54 = vrot.slane %v404_v52, 2 }
 0x162   : > { %v406_v55 = vadd.f32 %v405_v54, %v404_v52 }
 0x164   : > { %v407_v56 = vrot.slane %v406_v55, 1 }
 0x166   : > { %v408_v57 = vadd.f32 %v407_v56, %v406_v55 }
 0x168   : > { %501 = vpush %v408_v57 }
 0x190   : > { %s500_s18 = spop %499 }
 0x199   : > { %s502_s19 = spop %501 }
 0x19a   : > { %s410_s23 = sadd.f32 %s502_s19, %s500_s18 }
 0x19c   : > { %v411_v58 = vstv %s410_s23 }
 0x19d   : > { %412 = vst [vmem:[%s168_s22] sm:$0xff] %v411_v58 }
 0x19e PF: > { %s19_s17 = sadd.s32 1, %s550_s17  }
 0x19f   : > { %p16_p9 = scmp.ge.s32.totalorder %s19_s17, 4  }
 0x1a1   :  { %18 = sbr.rel (!%p16_p9) target bundleno = 16 (0x10), region = 61 }

</bundles_post_ra>
